<compile_context>
chip_gen: v6e
topology: v6e:2x2x1
jax: 0.10.0
libtpu: 0.0.40
codegen_flags: <defaults>
</compile_context>

<pallas_src>
import functools

import jax
import jax.numpy as jnp
from jax import lax
from jax.experimental import pallas as pl
from jax.experimental.pallas import tpu as pltpu

D_MODEL = 64
N_HEAD = 4
HEAD_DIM = D_MODEL // N_HEAD
N_EXPERTS = 8
EXPERT_HIDDEN = 128
SHARED_HIDDEN = 512
GATE_BLOCK = 128          # gate logits padded to one full lane tile in wfused
LN_EPS = 1e-5
NEG_INF = -1e30


# ------------------------------ fused kernel --------------------------------

def _layer_kernel(xq_ref, xkv_ref,
                  wq_ref, wk_ref, wv_ref, bq_ref, bk_ref, bv_ref,
                  wout_ref, bout_ref, ln1_g_ref, ln1_b_ref,
                  wfused_ref, bfused_ref, w2_ref, b2_ref,
                  sw2_ref, sb2_ref, ln2_g_ref, ln2_b_ref,
                  out_ref,
                  m_sc, l_sc, acc_sc,
                  *, sp, row_block, kv_block, n_head, head_dim,
                  n_experts, expert_hidden, shared_hidden, eps):
    f32, bf16 = jnp.float32, jnp.bfloat16
    kv_i = pl.program_id(2)

    # ---- flash-attention accumulators: init at the first KV tile -----------
    @pl.when(kv_i == 0)
    def _():
        m_sc[...] = jnp.full_like(m_sc, NEG_INF)
        l_sc[...] = jnp.zeros_like(l_sc)
        acc_sc[...] = jnp.zeros_like(acc_sc)

    # ---- Q for the row tile, K/V for the KV tile, batched over heads -------
    xq_bf = xq_ref[...].astype(bf16)                     # (RT, D), cast once
    xkv_bf = xkv_ref[...].astype(bf16)                   # (KT, D)
    xq_b = jnp.broadcast_to(xq_bf[None], (n_head,) + xq_bf.shape)
    xkv_b = jnp.broadcast_to(xkv_bf[None], (n_head,) + xkv_bf.shape)

    def head_proj(x_b, w_ref, b_ref):
        y = lax.dot_general(x_b, w_ref[...], (((2,), (1,)), ((0,), (0,))),
                            preferred_element_type=f32)
        return (y + b_ref[...]).astype(bf16)             # (H, rows, hd)

    q = head_proj(xq_b, wq_ref, bq_ref)                  # 1/sqrt(hd) pre-folded
    k = head_proj(xkv_b, wk_ref, bk_ref)
    v = head_proj(xkv_b, wv_ref, bv_ref)

    # ---- masked online-softmax update ---------------------------------------
    s = lax.dot_general(q, k, (((2,), (2,)), ((0,), (0,))),
                        preferred_element_type=f32)      # (H, RT, KT)
    q_pos = (pl.program_id(1) * row_block
             + lax.broadcasted_iota(jnp.int32, (row_block, 1), 0))
    kv_pos = (kv_i * kv_block
              + lax.broadcasted_iota(jnp.int32, (1, kv_block), 1))
    # pcpt queries (pos < sp) attend to pcpt keys only; gen queries attend to all.
    allowed = jnp.logical_or(kv_pos < sp, q_pos >= sp).astype(f32)[None]

    m_prev = m_sc[...]
    m_new = jnp.maximum(m_prev, jnp.max(s, axis=-1, keepdims=True))
    p = jnp.exp(s - m_new) * allowed
    alpha = jnp.exp(m_prev - m_new)
    l_sc[...] = alpha * l_sc[...] + jnp.sum(p, axis=-1, keepdims=True)
    acc_sc[...] = alpha * acc_sc[...] + lax.dot_general(
        p.astype(bf16), v, (((2,), (1,)), ((0,), (0,))),
        preferred_element_type=f32)
    m_sc[...] = m_new

    # ---- after the last KV tile: out-proj, LN1, MoE, LN2, write the tile ----
    @pl.when(kv_i == pl.num_programs(2) - 1)
    def _():
        def layer_norm(x, g_ref, b_ref):
            mu = jnp.mean(x, axis=-1, keepdims=True)
            xc = x - mu
            var = jnp.mean(xc * xc, axis=-1, keepdims=True)
            return xc * lax.rsqrt(var + eps) * g_ref[...] + b_ref[...]

        ctx = (acc_sc[...] * pl.reciprocal(l_sc[...], approx=True)).astype(bf16)
        attn = lax.dot_general(ctx, wout_ref[...], (((2,), (1,)), ((0,), (0,))),
                               preferred_element_type=f32)      # (H, RT, D)
        attn = jnp.sum(attn, axis=0) + bout_ref[...]            # (RT, D)

        h_tok = layer_norm(xq_ref[...] + attn, ln1_g_ref, ln1_b_ref)
        h_bf = h_tok.astype(bf16)                               # cast once

        ne, eh, shd = n_experts, expert_hidden, shared_hidden
        # one fused matmul: [routed up-proj | shared up-proj | gate (padded)]
        fused = (jnp.dot(h_bf, wfused_ref[...], preferred_element_type=f32)
                 + bfused_ref[...])
        hid = jnp.maximum(fused[:, :ne * eh], 0.0)              # (RT, E*eh)
        shh = jnp.maximum(fused[:, ne * eh:ne * eh + shd], 0.0)  # (RT, SH)
        logits = fused[:, ne * eh + shd:ne * eh + shd + ne]     # (RT, E)

        # top-1 gate: first argmax + softmax weight of the winner
        max_l = jnp.max(logits, axis=-1, keepdims=True)
        z = jnp.exp(logits - max_l)
        top_w = 1.0 / jnp.sum(z, axis=-1, keepdims=True)        # softmax max value
        col = lax.broadcasted_iota(jnp.int32, logits.shape, 1)
        first = jnp.min(jnp.where(logits >= max_l, col, ne),
                        axis=-1, keepdims=True)
        coeff = jnp.where(col == first, top_w, 0.0)             # (RT, E)

        # routed experts: gate coeff folded via lane-tile-aligned reshape
        hid_w = (hid.reshape(row_block, ne, eh) * coeff[:, :, None]
                 ).reshape(row_block, ne * eh)
        routed = (jnp.dot(hid_w.astype(bf16), w2_ref[...],
                          preferred_element_type=f32)
                  + jnp.dot(coeff.astype(bf16), b2_ref[...],
                            preferred_element_type=f32))
        shared = (jnp.dot(shh.astype(bf16), sw2_ref[...],
                          preferred_element_type=f32) + sb2_ref[...])

        out_ref[...] = layer_norm(h_tok + routed + shared,
                                  ln2_g_ref, ln2_b_ref)


# ------------------------------ wrapper --------------------------------------

def _const_index_map(ndim):
    zeros = (0,) * ndim
    return lambda b, i, k: zeros


def pack_params(p):
    """Repack module-layout params into the fused-kernel weight layout."""
    D, H, hd = D_MODEL, N_HEAD, HEAD_DIM
    E = N_EXPERTS
    f32, bf16 = jnp.float32, jnp.bfloat16
    scale = 1.0 / (hd ** 0.5)           # folded into Q (exact: power of two)

    wqkv, bqkv = p["wqkv"], p["bqkv"]

    def head_w(cols, s=1.0):            # (D, D) head-major cols -> (H, D, hd)
        return (cols.reshape(D, H, hd).transpose(1, 0, 2) * s).astype(bf16)

    def head_b(cols, s=1.0):            # (1, D) -> (H, 1, hd)
        return (cols.reshape(H, 1, hd) * s).astype(f32)

    wq_h = head_w(wqkv[:, :D], scale)
    wk_h = head_w(wqkv[:, D:2 * D])
    wv_h = head_w(wqkv[:, 2 * D:])
    bq_h = head_b(bqkv[:, :D], scale)
    bk_h = head_b(bqkv[:, D:2 * D])
    bv_h = head_b(bqkv[:, 2 * D:])
    wout_h = p["wout"].reshape(H, hd, D)

    # fused h_tok weight: [routed up-proj | shared up-proj | gate padded to 128]
    gate_pad = jnp.pad(p["gate_w_t"], ((0, 0), (0, GATE_BLOCK - E)))
    wfused = jnp.concatenate([p["w1cat"], p["sw1"], gate_pad], axis=1)
    bfused = jnp.concatenate(
        [p["b1cat"], p["sb1"], jnp.zeros((1, GATE_BLOCK), f32)], axis=1)

    return (wq_h, wk_h, wv_h, bq_h, bk_h, bv_h,
            wout_h, p["bout"], p["ln1_g"], p["ln1_b"],
            wfused, bfused, p["w2cat"], p["b2stack"].astype(bf16),
            p["sw2"], p["sb2"], p["ln2_g"], p["ln2_b"])


def flash_scgpt_layer(pcpt, gen, params, *, row_block=None, kv_block=None):
    """FlashscGPTLayer.forward (post-norm, eval mode) as one fused Pallas call."""
    B, Sp, D = pcpt.shape
    Sg = gen.shape[1]
    S = Sp + Sg
    x = jnp.concatenate([pcpt, gen], axis=1)        # merged [pcpt; gen] stream

    def pick(total, pref):
        return total if (total <= pref or total % pref != 0) else pref

    if row_block is None:
        row_block = pick(S, 256)
    if kv_block is None:
        kv_block = pick(S, 512)
    # TODO(synk): pad ragged sequence lengths instead of requiring divisibility.
    assert S % row_block == 0 and S % kv_block == 0
    n_row, n_kv = S // row_block, S // kv_block

    weights = pack_params(params)
    kernel = functools.partial(
        _layer_kernel, sp=Sp, row_block=row_block, kv_block=kv_block,
        n_head=N_HEAD, head_dim=HEAD_DIM, n_experts=N_EXPERTS,
        expert_hidden=EXPERT_HIDDEN, shared_hidden=SHARED_HIDDEN, eps=LN_EPS)

    in_specs = (
        [pl.BlockSpec((None, row_block, D), lambda b, i, k: (b, i, 0)),
         pl.BlockSpec((None, kv_block, D), lambda b, i, k: (b, k, 0))]
        + [pl.BlockSpec(w.shape, _const_index_map(w.ndim)) for w in weights])
    out_specs = pl.BlockSpec((None, row_block, D), lambda b, i, k: (b, i, 0))

    out = pl.pallas_call(
        kernel,
        grid=(B, n_row, n_kv),
        in_specs=in_specs,
        out_specs=out_specs,
        out_shape=jax.ShapeDtypeStruct((B, S, D), jnp.float32),
        scratch_shapes=[
            pltpu.VMEM((N_HEAD, row_block, 1), jnp.float32),          # running max
            pltpu.VMEM((N_HEAD, row_block, 1), jnp.float32),          # running denom
            pltpu.VMEM((N_HEAD, row_block, HEAD_DIM), jnp.float32),   # running PV acc
        ],
        compiler_params=pltpu.CompilerParams(
            dimension_semantics=("parallel", "parallel", "arbitrary"),
            vmem_limit_bytes=48 * 1024 * 1024),
    )(x, x, *weights)
    return out[:, :Sp, :], out[:, Sp:, :]


# ---------------------- pure-JAX reference (for checking) --------------------

def reference_layer(pcpt, gen, p):
    """Eval-mode reference mirroring the PyTorch module (same bf16 weights)."""
    f32, bf16 = jnp.float32, jnp.bfloat16
    B, Sp, D = pcpt.shape
    Sg = gen.shape[1]
    H, hd = N_HEAD, HEAD_DIM

    def lin(x, w, b):
        return jnp.dot(x.astype(bf16), w, preferred_element_type=f32) + b

    def ln(x, g, b):
        mu = jnp.mean(x, axis=-1, keepdims=True)
        xc = x - mu
        var = jnp.mean(xc * xc, axis=-1, keepdims=True)
        return xc * jax.lax.rsqrt(var + LN_EPS) * g + b

    def split_heads(qkv, S):
        qkv = qkv.reshape(B, S, 3, H, hd)
        return tuple(jnp.transpose(qkv[:, :, i], (0, 2, 1, 3)) for i in range(3))

    qkv_p = lin(pcpt.reshape(-1, D), p["wqkv"], p["bqkv"]).reshape(B, Sp, 3 * D)
    qkv_g = lin(gen.reshape(-1, D), p["wqkv"], p["bqkv"]).reshape(B, Sg, 3 * D)
    q_p, k_p, v_p = split_heads(qkv_p, Sp)
    q_g, k_g, v_g = split_heads(qkv_g, Sg)

    def attn(q, k, v):
        s = jnp.einsum("bhqd,bhkd->bhqk", q.astype(bf16), k.astype(bf16),
                       preferred_element_type=f32) / (hd ** 0.5)
        w = jax.nn.softmax(s, axis=-1)
        o = jnp.einsum("bhqk,bhkd->bhqd", w.astype(bf16), v.astype(bf16),
                       preferred_element_type=f32)
        return jnp.transpose(o, (0, 2, 1, 3)).reshape(-1, D)

    attn_p = lin(attn(q_p, k_p, v_p), p["wout"], p["bout"]).reshape(B, Sp, D)
    k_c = jnp.concatenate([k_p, k_g], axis=2)
    v_c = jnp.concatenate([v_p, v_g], axis=2)
    attn_g = lin(attn(q_g, k_c, v_c), p["wout"], p["bout"]).reshape(B, Sg, D)

    def moe(h):                                  # h: (B, S, D) post-LN1
        flat = h.reshape(-1, D)
        logits = jnp.dot(flat.astype(bf16), p["gate_w_t"],
                         preferred_element_type=f32)
        scores = jax.nn.softmax(logits, axis=-1)
        top_w = jnp.max(scores, axis=-1, keepdims=True)
        top_i = jnp.argmax(scores, axis=-1)
        routed = jnp.zeros_like(flat)
        EH = EXPERT_HIDDEN
        for e in range(N_EXPERTS):
            w1 = p["w1cat"][:, e * EH:(e + 1) * EH]
            b1 = p["b1cat"][:, e * EH:(e + 1) * EH]
            w2 = p["w2cat"][e * EH:(e + 1) * EH, :]
            b2 = p["b2stack"][e:e + 1, :]
            hid = jnp.maximum(
                jnp.dot(flat.astype(bf16), w1, preferred_element_type=f32) + b1,
                0.0)
            out_e = jnp.dot(hid.astype(bf16), w2, preferred_element_type=f32) + b2
            c = jnp.where(top_i[:, None] == e, top_w, 0.0)
            routed = routed + c * out_e
        sh = jnp.maximum(
            jnp.dot(flat.astype(bf16), p["sw1"], preferred_element_type=f32)
            + p["sb1"], 0.0)
        shared = (jnp.dot(sh.astype(bf16), p["sw2"], preferred_element_type=f32)
                  + p["sb2"])
        return (routed + shared).reshape(h.shape)

    def post_block(x, x2):
        h = ln(x + x2, p["ln1_g"], p["ln1_b"])
        y = h + moe(h)
        return ln(y, p["ln2_g"], p["ln2_b"])

    return post_block(pcpt, attn_p), post_block(gen, attn_g)


# --------------------------- params / entry point ----------------------------

def init_params(key):
    ks = jax.random.split(key, 20)
    s = 0.02
    D, E, EH, SH = D_MODEL, N_EXPERTS, EXPERT_HIDDEN, SHARED_HIDDEN

    def w(k, shape):   # matmul weights stored bf16 (pre-transposed (in, out))
        return (s * jax.random.normal(k, shape, jnp.float32)).astype(jnp.bfloat16)

    def b(k, shape):   # biases / LN params stay f32
        return s * jax.random.normal(k, shape, jnp.float32)

    return {
        "wqkv": w(ks[0], (D, 3 * D)),
        "bqkv": b(ks[1], (1, 3 * D)),
        "wout": w(ks[2], (D, D)),
        "bout": b(ks[3], (1, D)),
        "ln1_g": 1.0 + 0.1 * jax.random.normal(ks[4], (1, D), jnp.float32),
        "ln1_b": b(ks[5], (1, D)),
        # MoE gate (F.linear with weight (E, D), no bias) -> stored as W^T
        "gate_w_t": w(ks[6], (D, E)),
        # routed experts, concatenated along the hidden axis
        "w1cat": w(ks[7], (D, E * EH)),
        "b1cat": b(ks[8], (1, E * EH)),
        "w2cat": w(ks[9], (E * EH, D)),
        "b2stack": b(ks[10], (E, D)),
        # shared expert
        "sw1": w(ks[11], (D, SH)),
        "sb1": b(ks[12], (1, SH)),
        "sw2": w(ks[13], (SH, D)),
        "sb2": b(ks[14], (1, D)),
        "ln2_g": 1.0 + 0.1 * jax.random.normal(ks[15], (1, D), jnp.float32),
        "ln2_b": b(ks[16], (1, D)),
    }


if __name__ == "__main__":
    key = jax.random.PRNGKey(0)
    k_p, k_g, k_w = jax.random.split(key, 3)
    B, S_PCPT, S_GEN = 2, 8, 8
    pcpt = jax.random.normal(k_p, (B, S_PCPT, D_MODEL), jnp.float32)
    gen = jax.random.normal(k_g, (B, S_GEN, D_MODEL), jnp.float32)
    params = init_params(k_w)

    # Small blocks on purpose so this run exercises the row/KV tiling, the
    # online-softmax accumulators and the pcpt/gen visibility mask.
    layer = jax.jit(functools.partial(flash_scgpt_layer,
                                      row_block=8, kv_block=8))
    pcpt_out, gen_out = layer(pcpt, gen, params)
    jax.block_until_ready((pcpt_out, gen_out))
    assert pcpt_out.shape == (B, S_PCPT, D_MODEL)
    assert gen_out.shape == (B, S_GEN, D_MODEL)
    assert bool(jnp.all(jnp.isfinite(pcpt_out)))
    assert bool(jnp.all(jnp.isfinite(gen_out)))

    ref_p, ref_g = jax.jit(reference_layer)(pcpt, gen, params)
    assert bool(jnp.allclose(pcpt_out, ref_p, atol=4e-2, rtol=4e-2)), "pcpt mismatch"
    assert bool(jnp.allclose(gen_out, ref_g, atol=4e-2, rtol=4e-2)), "gen mismatch"

    # TODO(synk): training-only paths (aux load-balance loss, training MoE
    # dispatch, dropout) and key-padding masks / attn_non_mask_position are not
    # implemented — eval-mode, unmasked semantics only.
    print("KERNEL_OK")
</pallas_src>

<mosaic_0001>
module attributes {stable_mosaic.version = 11 : i64} {
  func.func @_layer_kernel(%arg0: i32, %arg1: i32, %arg2: i32, %arg3: memref<1x8x64xf32, #tpu.memory_space<vmem>>, %arg4: memref<1x8x64xf32, #tpu.memory_space<vmem>>, %arg5: memref<4x64x16xbf16, #tpu.memory_space<vmem>>, %arg6: memref<4x64x16xbf16, #tpu.memory_space<vmem>>, %arg7: memref<4x64x16xbf16, #tpu.memory_space<vmem>>, %arg8: memref<4x1x16xf32, #tpu.memory_space<vmem>>, %arg9: memref<4x1x16xf32, #tpu.memory_space<vmem>>, %arg10: memref<4x1x16xf32, #tpu.memory_space<vmem>>, %arg11: memref<4x16x64xbf16, #tpu.memory_space<vmem>>, %arg12: memref<1x64xf32, #tpu.memory_space<vmem>>, %arg13: memref<1x64xf32, #tpu.memory_space<vmem>>, %arg14: memref<1x64xf32, #tpu.memory_space<vmem>>, %arg15: memref<64x1664xbf16, #tpu.memory_space<vmem>>, %arg16: memref<1x1664xf32, #tpu.memory_space<vmem>>, %arg17: memref<1024x64xbf16, #tpu.memory_space<vmem>>, %arg18: memref<8x64xbf16, #tpu.memory_space<vmem>>, %arg19: memref<512x64xbf16, #tpu.memory_space<vmem>>, %arg20: memref<1x64xf32, #tpu.memory_space<vmem>>, %arg21: memref<1x64xf32, #tpu.memory_space<vmem>>, %arg22: memref<1x64xf32, #tpu.memory_space<vmem>>, %arg23: memref<1x8x64xf32, #tpu.memory_space<vmem>>, %arg24: memref<4x8x1xf32, #tpu.memory_space<vmem>>, %arg25: memref<4x8x1xf32, #tpu.memory_space<vmem>>, %arg26: memref<4x8x16xf32, #tpu.memory_space<vmem>>) attributes {dimension_semantics = [#tpu.dimension_semantics<parallel>, #tpu.dimension_semantics<parallel>, #tpu.dimension_semantics<arbitrary>], iteration_bounds = array<i64: 2, 2, 2>, scalar_prefetch = 0 : i64, scratch_operands = 3 : i64, tpu.core_type = #tpu.core_type<tc>, window_params = [{transform_indices = @transform_0, window_bounds = array<i64: 1, 8, 64>}, {transform_indices = @transform_1, window_bounds = array<i64: 1, 8, 64>}, {pipeline_mode = #tpu.pipeline_mode<synchronous>, transform_indices = @transform_2, window_bounds = array<i64: 4, 64, 16>}, {pipeline_mode = #tpu.pipeline_mode<synchronous>, transform_indices = @transform_3, window_bounds = array<i64: 4, 64, 16>}, {pipeline_mode = #tpu.pipeline_mode<synchronous>, transform_indices = @transform_4, window_bounds = array<i64: 4, 64, 16>}, {pipeline_mode = #tpu.pipeline_mode<synchronous>, transform_indices = @transform_5, window_bounds = array<i64: 4, 1, 16>}, {pipeline_mode = #tpu.pipeline_mode<synchronous>, transform_indices = @transform_6, window_bounds = array<i64: 4, 1, 16>}, {pipeline_mode = #tpu.pipeline_mode<synchronous>, transform_indices = @transform_7, window_bounds = array<i64: 4, 1, 16>}, {pipeline_mode = #tpu.pipeline_mode<synchronous>, transform_indices = @transform_8, window_bounds = array<i64: 4, 16, 64>}, {pipeline_mode = #tpu.pipeline_mode<synchronous>, transform_indices = @transform_9, window_bounds = array<i64: 1, 64>}, {pipeline_mode = #tpu.pipeline_mode<synchronous>, transform_indices = @transform_10, window_bounds = array<i64: 1, 64>}, {pipeline_mode = #tpu.pipeline_mode<synchronous>, transform_indices = @transform_11, window_bounds = array<i64: 1, 64>}, {pipeline_mode = #tpu.pipeline_mode<synchronous>, transform_indices = @transform_12, window_bounds = array<i64: 64, 1664>}, {pipeline_mode = #tpu.pipeline_mode<synchronous>, transform_indices = @transform_13, window_bounds = array<i64: 1, 1664>}, {pipeline_mode = #tpu.pipeline_mode<synchronous>, transform_indices = @transform_14, window_bounds = array<i64: 1024, 64>}, {pipeline_mode = #tpu.pipeline_mode<synchronous>, transform_indices = @transform_15, window_bounds = array<i64: 8, 64>}, {pipeline_mode = #tpu.pipeline_mode<synchronous>, transform_indices = @transform_16, window_bounds = array<i64: 512, 64>}, {pipeline_mode = #tpu.pipeline_mode<synchronous>, transform_indices = @transform_17, window_bounds = array<i64: 1, 64>}, {pipeline_mode = #tpu.pipeline_mode<synchronous>, transform_indices = @transform_18, window_bounds = array<i64: 1, 64>}, {pipeline_mode = #tpu.pipeline_mode<synchronous>, transform_indices = @transform_19, window_bounds = array<i64: 1, 64>}, {transform_indices = @transform_20, window_bounds = array<i64: 1, 8, 64>}]} {
    %c0_i32 = arith.constant 0 : i32
    %0 = arith.cmpi eq, %arg2, %c0_i32 : i32
    %1 = arith.extui %0 : i1 to i32
    %c0_i32_0 = arith.constant 0 : i32
    %2 = arith.cmpi ne, %1, %c0_i32_0 : i32
    scf.if %2 {
      %cst_52 = arith.constant -1.000000e+30 : f32
      %80 = vector.broadcast %cst_52 : f32 to vector<4x8x1xf32>
      %c0_53 = arith.constant 0 : index
      %c0_54 = arith.constant 0 : index
      %c0_55 = arith.constant 0 : index
      %81 = vector.load %arg24[%c0_53, %c0_54, %c0_55] : memref<4x8x1xf32, #tpu.memory_space<vmem>>, vector<4x8x1xf32>
      tpu.vector_store %arg24[%c0_53, %c0_54, %c0_55], %80 {strides = array<i32>} : memref<4x8x1xf32, #tpu.memory_space<vmem>>, vector<4x8x1xf32>,
      %cst_56 = arith.constant 0.000000e+00 : f32
      %82 = vector.broadcast %cst_56 : f32 to vector<4x8x1xf32>
      %c0_57 = arith.constant 0 : index
      %c0_58 = arith.constant 0 : index
      %c0_59 = arith.constant 0 : index
      %83 = vector.load %arg25[%c0_57, %c0_58, %c0_59] : memref<4x8x1xf32, #tpu.memory_space<vmem>>, vector<4x8x1xf32>
      tpu.vector_store %arg25[%c0_57, %c0_58, %c0_59], %82 {strides = array<i32>} : memref<4x8x1xf32, #tpu.memory_space<vmem>>, vector<4x8x1xf32>,
      %cst_60 = arith.constant 0.000000e+00 : f32
      %84 = vector.broadcast %cst_60 : f32 to vector<4x8x16xf32>
      %c0_61 = arith.constant 0 : index
      %c0_62 = arith.constant 0 : index
      %c0_63 = arith.constant 0 : index
      %85 = vector.load %arg26[%c0_61, %c0_62, %c0_63] : memref<4x8x16xf32, #tpu.memory_space<vmem>>, vector<4x8x16xf32>
      tpu.vector_store %arg26[%c0_61, %c0_62, %c0_63], %84 {strides = array<i32>} : memref<4x8x16xf32, #tpu.memory_space<vmem>>, vector<4x8x16xf32>,
    } else {
    }
    %c0 = arith.constant 0 : index
    %c0_1 = arith.constant 0 : index
    %c0_2 = arith.constant 0 : index
    %3 = vector.load %arg3[%c0, %c0_1, %c0_2] : memref<1x8x64xf32, #tpu.memory_space<vmem>>, vector<1x8x64xf32>
    %4 = vector.shape_cast %3 : vector<1x8x64xf32> to vector<8x64xf32>
    %5 = arith.truncf %4 : vector<8x64xf32> to vector<8x64xbf16>
    %c0_3 = arith.constant 0 : index
    %c0_4 = arith.constant 0 : index
    %c0_5 = arith.constant 0 : index
    %6 = vector.load %arg4[%c0_3, %c0_4, %c0_5] : memref<1x8x64xf32, #tpu.memory_space<vmem>>, vector<1x8x64xf32>
    %7 = vector.shape_cast %6 : vector<1x8x64xf32> to vector<8x64xf32>
    %8 = arith.truncf %7 : vector<8x64xf32> to vector<8x64xbf16>
    %9 = vector.shape_cast %5 : vector<8x64xbf16> to vector<1x8x64xbf16>
    %10 = vector.shape_cast %9 : vector<1x8x64xbf16> to vector<1x8x64xbf16>
    %11 = vector.broadcast %10 : vector<1x8x64xbf16> to vector<4x8x64xbf16>
    %12 = vector.shape_cast %8 : vector<8x64xbf16> to vector<1x8x64xbf16>
    %13 = vector.shape_cast %12 : vector<1x8x64xbf16> to vector<1x8x64xbf16>
    %14 = vector.broadcast %13 : vector<1x8x64xbf16> to vector<4x8x64xbf16>
    %c0_6 = arith.constant 0 : index
    %c0_7 = arith.constant 0 : index
    %c0_8 = arith.constant 0 : index
    %15 = vector.load %arg5[%c0_6, %c0_7, %c0_8] : memref<4x64x16xbf16, #tpu.memory_space<vmem>>, vector<4x64x16xbf16>
    %cst = arith.constant dense<0.000000e+00> : vector<4x8x16xf32>
    %16 = tpu.matmul %11, %15, %cst {dimension_numbers = #tpu.dot_dimension_numbers<[2], [1], [1], [2], [0, 0, 0, 1, 1, 2], [0], [0]>} : vector<4x8x64xbf16>, vector<4x64x16xbf16>, vector<4x8x16xf32> -> vector<4x8x16xf32>
    %c0_9 = arith.constant 0 : index
    %c0_10 = arith.constant 0 : index
    %c0_11 = arith.constant 0 : index
    %17 = vector.load %arg8[%c0_9, %c0_10, %c0_11] : memref<4x1x16xf32, #tpu.memory_space<vmem>>, vector<4x1x16xf32>
    %18 = vector.broadcast %17 : vector<4x1x16xf32> to vector<4x8x16xf32>
    %19 = arith.addf %16, %18 : vector<4x8x16xf32>
    %20 = arith.truncf %19 : vector<4x8x16xf32> to vector<4x8x16xbf16>
    %c0_12 = arith.constant 0 : index
    %c0_13 = arith.constant 0 : index
    %c0_14 = arith.constant 0 : index
    %21 = vector.load %arg6[%c0_12, %c0_13, %c0_14] : memref<4x64x16xbf16, #tpu.memory_space<vmem>>, vector<4x64x16xbf16>
    %cst_15 = arith.constant dense<0.000000e+00> : vector<4x8x16xf32>
    %22 = tpu.matmul %14, %21, %cst_15 {dimension_numbers = #tpu.dot_dimension_numbers<[2], [1], [1], [2], [0, 0, 0, 1, 1, 2], [0], [0]>} : vector<4x8x64xbf16>, vector<4x64x16xbf16>, vector<4x8x16xf32> -> vector<4x8x16xf32>
    %c0_16 = arith.constant 0 : index
    %c0_17 = arith.constant 0 : index
    %c0_18 = arith.constant 0 : index
    %23 = vector.load %arg9[%c0_16, %c0_17, %c0_18] : memref<4x1x16xf32, #tpu.memory_space<vmem>>, vector<4x1x16xf32>
    %24 = vector.broadcast %23 : vector<4x1x16xf32> to vector<4x8x16xf32>
    %25 = arith.addf %22, %24 : vector<4x8x16xf32>
    %26 = arith.truncf %25 : vector<4x8x16xf32> to vector<4x8x16xbf16>
    %c0_19 = arith.constant 0 : index
    %c0_20 = arith.constant 0 : index
    %c0_21 = arith.constant 0 : index
    %27 = vector.load %arg7[%c0_19, %c0_20, %c0_21] : memref<4x64x16xbf16, #tpu.memory_space<vmem>>, vector<4x64x16xbf16>
    %cst_22 = arith.constant dense<0.000000e+00> : vector<4x8x16xf32>
    %28 = tpu.matmul %14, %27, %cst_22 {dimension_numbers = #tpu.dot_dimension_numbers<[2], [1], [1], [2], [0, 0, 0, 1, 1, 2], [0], [0]>} : vector<4x8x64xbf16>, vector<4x64x16xbf16>, vector<4x8x16xf32> -> vector<4x8x16xf32>
    %c0_23 = arith.constant 0 : index
    %c0_24 = arith.constant 0 : index
    %c0_25 = arith.constant 0 : index
    %29 = vector.load %arg10[%c0_23, %c0_24, %c0_25] : memref<4x1x16xf32, #tpu.memory_space<vmem>>, vector<4x1x16xf32>
    %30 = vector.broadcast %29 : vector<4x1x16xf32> to vector<4x8x16xf32>
    %31 = arith.addf %28, %30 : vector<4x8x16xf32>
    %32 = arith.truncf %31 : vector<4x8x16xf32> to vector<4x8x16xbf16>
    %cst_26 = arith.constant dense<0.000000e+00> : vector<4x8x8xf32>
    %33 = tpu.matmul %20, %26, %cst_26 {dimension_numbers = #tpu.dot_dimension_numbers<[2], [2], [1], [1], [0, 0, 0, 1, 1, 1], [0], [0]>} : vector<4x8x16xbf16>, vector<4x8x16xbf16>, vector<4x8x8xf32> -> vector<4x8x8xf32>
    %c8_i32 = arith.constant 8 : i32
    %34 = arith.muli %arg1, %c8_i32 : i32
    %35 = tpu.iota {dimensions = array<i32: 0>} : vector<8x1xi32>
    %36 = vector.broadcast %34 : i32 to vector<8x1xi32>
    %37 = arith.addi %36, %35 : vector<8x1xi32>
    %c8_i32_27 = arith.constant 8 : i32
    %38 = arith.muli %arg2, %c8_i32_27 : i32
    %39 = tpu.iota {dimensions = array<i32: 1>} : vector<1x8xi32>
    %40 = vector.broadcast %38 : i32 to vector<1x8xi32>
    %41 = arith.addi %40, %39 : vector<1x8xi32>
    %c8_i32_28 = arith.constant 8 : i32
    %42 = vector.broadcast %c8_i32_28 : i32 to vector<1x8xi32>
    %43 = arith.cmpi slt, %41, %42 : vector<1x8xi32>
    %c8_i32_29 = arith.constant 8 : i32
    %44 = vector.broadcast %c8_i32_29 : i32 to vector<8x1xi32>
    %45 = arith.cmpi sge, %37, %44 : vector<8x1xi32>
    %46 = vector.broadcast %43 : vector<1x8xi1> to vector<8x8xi1>
    %47 = vector.broadcast %45 : vector<8x1xi1> to vector<8x8xi1>
    %48 = arith.ori %46, %47 : vector<8x8xi1>
    %49 = arith.extui %48 : vector<8x8xi1> to vector<8x8xi32>
    %50 = arith.sitofp %49 : vector<8x8xi32> to vector<8x8xf32>
    %51 = vector.shape_cast %50 : vector<8x8xf32> to vector<1x8x8xf32>
    %c0_30 = arith.constant 0 : index
    %c0_31 = arith.constant 0 : index
    %c0_32 = arith.constant 0 : index
    %52 = vector.load %arg24[%c0_30, %c0_31, %c0_32] : memref<4x8x1xf32, #tpu.memory_space<vmem>>, vector<4x8x1xf32>
    %cst_33 = arith.constant dense<0xFF800000> : vector<4x8xf32>
    %53 = vector.multi_reduction <maximumf>, %33, %cst_33 [2] : vector<4x8x8xf32> to vector<4x8xf32>
    %54 = vector.shape_cast %53 : vector<4x8xf32> to vector<4x8x1xf32>
    %55 = arith.maximumf %52, %54 : vector<4x8x1xf32>
    %56 = vector.broadcast %55 : vector<4x8x1xf32> to vector<4x8x8xf32>
    %57 = arith.subf %33, %56 : vector<4x8x8xf32>
    %58 = math.exp %57 : vector<4x8x8xf32>
    %59 = vector.broadcast %51 : vector<1x8x8xf32> to vector<4x8x8xf32>
    %60 = arith.mulf %58, %59 : vector<4x8x8xf32>
    %61 = arith.subf %52, %55 : vector<4x8x1xf32>
    %62 = math.exp %61 : vector<4x8x1xf32>
    %c0_34 = arith.constant 0 : index
    %c0_35 = arith.constant 0 : index
    %c0_36 = arith.constant 0 : index
    %63 = vector.load %arg25[%c0_34, %c0_35, %c0_36] : memref<4x8x1xf32, #tpu.memory_space<vmem>>, vector<4x8x1xf32>
    %64 = arith.mulf %62, %63 : vector<4x8x1xf32>
    %cst_37 = arith.constant dense<0.000000e+00> : vector<4x8xf32>
    %65 = vector.multi_reduction <add>, %60, %cst_37 [2] : vector<4x8x8xf32> to vector<4x8xf32>
    %66 = vector.shape_cast %65 : vector<4x8xf32> to vector<4x8x1xf32>
    %67 = arith.addf %64, %66 : vector<4x8x1xf32>
    %c0_38 = arith.constant 0 : index
    %c0_39 = arith.constant 0 : index
    %c0_40 = arith.constant 0 : index
    %68 = vector.load %arg25[%c0_38, %c0_39, %c0_40] : memref<4x8x1xf32, #tpu.memory_space<vmem>>, vector<4x8x1xf32>
    tpu.vector_store %arg25[%c0_38, %c0_39, %c0_40], %67 {strides = array<i32>} : memref<4x8x1xf32, #tpu.memory_space<vmem>>, vector<4x8x1xf32>,
    %c0_41 = arith.constant 0 : index
    %c0_42 = arith.constant 0 : index
    %c0_43 = arith.constant 0 : index
    %69 = vector.load %arg26[%c0_41, %c0_42, %c0_43] : memref<4x8x16xf32, #tpu.memory_space<vmem>>, vector<4x8x16xf32>
    %70 = vector.broadcast %62 : vector<4x8x1xf32> to vector<4x8x16xf32>
    %71 = arith.mulf %70, %69 : vector<4x8x16xf32>
    %72 = arith.truncf %60 : vector<4x8x8xf32> to vector<4x8x8xbf16>
    %cst_44 = arith.constant dense<0.000000e+00> : vector<4x8x16xf32>
    %73 = tpu.matmul %72, %32, %cst_44 {dimension_numbers = #tpu.dot_dimension_numbers<[2], [1], [1], [2], [0, 0, 0, 1, 1, 2], [0], [0]>} : vector<4x8x8xbf16>, vector<4x8x16xbf16>, vector<4x8x16xf32> -> vector<4x8x16xf32>
    %74 = arith.addf %71, %73 : vector<4x8x16xf32>
    %c0_45 = arith.constant 0 : index
    %c0_46 = arith.constant 0 : index
    %c0_47 = arith.constant 0 : index
    %75 = vector.load %arg26[%c0_45, %c0_46, %c0_47] : memref<4x8x16xf32, #tpu.memory_space<vmem>>, vector<4x8x16xf32>
    tpu.vector_store %arg26[%c0_45, %c0_46, %c0_47], %74 {strides = array<i32>} : memref<4x8x16xf32, #tpu.memory_space<vmem>>, vector<4x8x16xf32>,
    %c0_48 = arith.constant 0 : index
    %c0_49 = arith.constant 0 : index
    %c0_50 = arith.constant 0 : index
    %76 = vector.load %arg24[%c0_48, %c0_49, %c0_50] : memref<4x8x1xf32, #tpu.memory_space<vmem>>, vector<4x8x1xf32>
    tpu.vector_store %arg24[%c0_48, %c0_49, %c0_50], %55 {strides = array<i32>} : memref<4x8x1xf32, #tpu.memory_space<vmem>>, vector<4x8x1xf32>,
    %c1_i32 = arith.constant 1 : i32
    %77 = arith.cmpi eq, %arg2, %c1_i32 : i32
    %78 = arith.extui %77 : i1 to i32
    %c0_i32_51 = arith.constant 0 : i32
    %79 = arith.cmpi ne, %78, %c0_i32_51 : i32
    scf.if %79 {
      %c0_52 = arith.constant 0 : index
      %c0_53 = arith.constant 0 : index
      %c0_54 = arith.constant 0 : index
      %80 = vector.load %arg26[%c0_52, %c0_53, %c0_54] : memref<4x8x16xf32, #tpu.memory_space<vmem>>, vector<4x8x16xf32>
      %c0_55 = arith.constant 0 : index
      %c0_56 = arith.constant 0 : index
      %c0_57 = arith.constant 0 : index
      %81 = vector.load %arg25[%c0_55, %c0_56, %c0_57] : memref<4x8x1xf32, #tpu.memory_space<vmem>>, vector<4x8x1xf32>
      %82 = tpu.reciprocal %81 {approx = true} : vector<4x8x1xf32> -> vector<4x8x1xf32>
      %83 = vector.broadcast %82 : vector<4x8x1xf32> to vector<4x8x16xf32>
      %84 = arith.mulf %80, %83 : vector<4x8x16xf32>
      %85 = arith.truncf %84 : vector<4x8x16xf32> to vector<4x8x16xbf16>
      %c0_58 = arith.constant 0 : index
      %c0_59 = arith.constant 0 : index
      %c0_60 = arith.constant 0 : index
      %86 = vector.load %arg11[%c0_58, %c0_59, %c0_60] : memref<4x16x64xbf16, #tpu.memory_space<vmem>>, vector<4x16x64xbf16>
      %cst_61 = arith.constant dense<0.000000e+00> : vector<4x8x64xf32>
      %87 = tpu.matmul %85, %86, %cst_61 {dimension_numbers = #tpu.dot_dimension_numbers<[2], [1], [1], [2], [0, 0, 0, 1, 1, 2], [0], [0]>} : vector<4x8x16xbf16>, vector<4x16x64xbf16>, vector<4x8x64xf32> -> vector<4x8x64xf32>
      %cst_62 = arith.constant dense<0.000000e+00> : vector<8x64xf32>
      %88 = vector.multi_reduction <add>, %87, %cst_62 [0] : vector<4x8x64xf32> to vector<8x64xf32>
      %c0_63 = arith.constant 0 : index
      %c0_64 = arith.constant 0 : index
      %89 = vector.load %arg12[%c0_63, %c0_64] : memref<1x64xf32, #tpu.memory_space<vmem>>, vector<1x64xf32>
      %90 = vector.broadcast %89 : vector<1x64xf32> to vector<8x64xf32>
      %91 = arith.addf %88, %90 : vector<8x64xf32>
      %c0_65 = arith.constant 0 : index
      %c0_66 = arith.constant 0 : index
      %c0_67 = arith.constant 0 : index
      %92 = vector.load %arg3[%c0_65, %c0_66, %c0_67] : memref<1x8x64xf32, #tpu.memory_space<vmem>>, vector<1x8x64xf32>
      %93 = vector.shape_cast %92 : vector<1x8x64xf32> to vector<8x64xf32>
      %94 = arith.addf %93, %91 : vector<8x64xf32>
      %cst_68 = arith.constant dense<0.000000e+00> : vector<8xf32>
      %95 = vector.multi_reduction <add>, %94, %cst_68 [1] : vector<8x64xf32> to vector<8xf32>
      %96 = vector.shape_cast %95 : vector<8xf32> to vector<8x1xf32>
      %cst_69 = arith.constant 6.400000e+01 : f32
      %97 = vector.broadcast %cst_69 : f32 to vector<8x1xf32>
      %98 = arith.divf %96, %97 : vector<8x1xf32>
      %99 = vector.broadcast %98 : vector<8x1xf32> to vector<8x64xf32>
      %100 = arith.subf %94, %99 : vector<8x64xf32>
      %101 = arith.mulf %100, %100 : vector<8x64xf32>
      %cst_70 = arith.constant dense<0.000000e+00> : vector<8xf32>
      %102 = vector.multi_reduction <add>, %101, %cst_70 [1] : vector<8x64xf32> to vector<8xf32>
      %103 = vector.shape_cast %102 : vector<8xf32> to vector<8x1xf32>
      %cst_71 = arith.constant 6.400000e+01 : f32
      %104 = vector.broadcast %cst_71 : f32 to vector<8x1xf32>
      %105 = arith.divf %103, %104 : vector<8x1xf32>
      %cst_72 = arith.constant 9.99999974E-6 : f32
      %106 = vector.broadcast %cst_72 : f32 to vector<8x1xf32>
      %107 = arith.addf %105, %106 : vector<8x1xf32>
      %108 = math.rsqrt %107 : vector<8x1xf32>
      %109 = vector.broadcast %108 : vector<8x1xf32> to vector<8x64xf32>
      %110 = arith.mulf %100, %109 : vector<8x64xf32>
      %c0_73 = arith.constant 0 : index
      %c0_74 = arith.constant 0 : index
      %111 = vector.load %arg13[%c0_73, %c0_74] : memref<1x64xf32, #tpu.memory_space<vmem>>, vector<1x64xf32>
      %112 = vector.broadcast %111 : vector<1x64xf32> to vector<8x64xf32>
      %113 = arith.mulf %110, %112 : vector<8x64xf32>
      %c0_75 = arith.constant 0 : index
      %c0_76 = arith.constant 0 : index
      %114 = vector.load %arg14[%c0_75, %c0_76] : memref<1x64xf32, #tpu.memory_space<vmem>>, vector<1x64xf32>
      %115 = vector.broadcast %114 : vector<1x64xf32> to vector<8x64xf32>
      %116 = arith.addf %113, %115 : vector<8x64xf32>
      %117 = arith.truncf %116 : vector<8x64xf32> to vector<8x64xbf16>
      %c0_77 = arith.constant 0 : index
      %c0_78 = arith.constant 0 : index
      %118 = vector.load %arg15[%c0_77, %c0_78] : memref<64x1664xbf16, #tpu.memory_space<vmem>>, vector<64x1664xbf16>
      %cst_79 = arith.constant dense<0.000000e+00> : vector<8x1664xf32>
      %119 = tpu.matmul %117, %118, %cst_79 {dimension_numbers = #tpu.dot_dimension_numbers<[1], [0], [0], [1], [0, 0, 1, 1], [], []>} : vector<8x64xbf16>, vector<64x1664xbf16>, vector<8x1664xf32> -> vector<8x1664xf32>
      %c0_80 = arith.constant 0 : index
      %c0_81 = arith.constant 0 : index
      %120 = vector.load %arg16[%c0_80, %c0_81] : memref<1x1664xf32, #tpu.memory_space<vmem>>, vector<1x1664xf32>
      %121 = vector.broadcast %120 : vector<1x1664xf32> to vector<8x1664xf32>
      %122 = arith.addf %119, %121 : vector<8x1664xf32>
      %123 = vector.extract_strided_slice %122 {offsets = [0, 0], sizes = [8, 1024], strides = [1, 1]} : vector<8x1664xf32> to vector<8x1024xf32>
      %cst_82 = arith.constant 0.000000e+00 : f32
      %124 = vector.broadcast %cst_82 : f32 to vector<8x1024xf32>
      %125 = arith.maximumf %123, %124 : vector<8x1024xf32>
      %126 = vector.extract_strided_slice %122 {offsets = [0, 1024], sizes = [8, 512], strides = [1, 1]} : vector<8x1664xf32> to vector<8x512xf32>
      %cst_83 = arith.constant 0.000000e+00 : f32
      %127 = vector.broadcast %cst_83 : f32 to vector<8x512xf32>
      %128 = arith.maximumf %126, %127 : vector<8x512xf32>
      %129 = vector.extract_strided_slice %122 {offsets = [0, 1536], sizes = [8, 8], strides = [1, 1]} : vector<8x1664xf32> to vector<8x8xf32>
      %cst_84 = arith.constant dense<0xFF800000> : vector<8xf32>
      %130 = vector.multi_reduction <maximumf>, %129, %cst_84 [1] : vector<8x8xf32> to vector<8xf32>
      %131 = vector.shape_cast %130 : vector<8xf32> to vector<8x1xf32>
      %132 = vector.broadcast %131 : vector<8x1xf32> to vector<8x8xf32>
      %133 = arith.subf %129, %132 : vector<8x8xf32>
      %134 = math.exp %133 : vector<8x8xf32>
      %cst_85 = arith.constant dense<0.000000e+00> : vector<8xf32>
      %135 = vector.multi_reduction <add>, %134, %cst_85 [1] : vector<8x8xf32> to vector<8xf32>
      %136 = vector.shape_cast %135 : vector<8xf32> to vector<8x1xf32>
      %cst_86 = arith.constant 1.000000e+00 : f32
      %137 = vector.broadcast %cst_86 : f32 to vector<8x1xf32>
      %138 = arith.divf %137, %136 : vector<8x1xf32>
      %139 = tpu.iota {dimensions = array<i32: 1>} : vector<8x8xi32>
      %140 = vector.broadcast %131 : vector<8x1xf32> to vector<8x8xf32>
      %141 = arith.cmpf oge, %129, %140 : vector<8x8xf32>
      %c8_i32_87 = arith.constant 8 : i32
      %142 = vector.broadcast %c8_i32_87 : i32 to vector<8x8xi32>
      %143 = arith.select %141, %139, %142 : vector<8x8xi1>, vector<8x8xi32>
      %cst_88 = arith.constant dense<2147483647> : vector<8xi32>
      %144 = vector.multi_reduction <minsi>, %143, %cst_88 [1] : vector<8x8xi32> to vector<8xi32>
      %145 = vector.shape_cast %144 : vector<8xi32> to vector<8x1xi32>
      %146 = vector.broadcast %145 : vector<8x1xi32> to vector<8x8xi32>
      %147 = arith.cmpi eq, %139, %146 : vector<8x8xi32>
      %cst_89 = arith.constant 0.000000e+00 : f32
      %148 = vector.shape_cast %138 : vector<8x1xf32> to vector<8x1xf32>
      %149 = vector.broadcast %148 : vector<8x1xf32> to vector<8x8xf32>
      %150 = vector.broadcast %cst_89 : f32 to vector<8x8xf32>
      %151 = arith.select %147, %149, %150 : vector<8x8xi1>, vector<8x8xf32>
      %152 = vector.shape_cast %125 : vector<8x1024xf32> to vector<8x8x128xf32>
      %153 = vector.shape_cast %151 : vector<8x8xf32> to vector<8x8x1xf32>
      %154 = vector.broadcast %153 : vector<8x8x1xf32> to vector<8x8x128xf32>
      %155 = arith.mulf %152, %154 : vector<8x8x128xf32>
      %156 = vector.shape_cast %155 : vector<8x8x128xf32> to vector<8x1024xf32>
      %157 = arith.truncf %156 : vector<8x1024xf32> to vector<8x1024xbf16>
      %c0_90 = arith.constant 0 : index
      %c0_91 = arith.constant 0 : index
      %158 = vector.load %arg17[%c0_90, %c0_91] : memref<1024x64xbf16, #tpu.memory_space<vmem>>, vector<1024x64xbf16>
      %cst_92 = arith.constant dense<0.000000e+00> : vector<8x64xf32>
      %159 = tpu.matmul %157, %158, %cst_92 {dimension_numbers = #tpu.dot_dimension_numbers<[1], [0], [0], [1], [0, 0, 1, 1], [], []>} : vector<8x1024xbf16>, vector<1024x64xbf16>, vector<8x64xf32> -> vector<8x64xf32>
      %160 = arith.truncf %151 : vector<8x8xf32> to vector<8x8xbf16>
      %c0_93 = arith.constant 0 : index
      %c0_94 = arith.constant 0 : index
      %161 = vector.load %arg18[%c0_93, %c0_94] : memref<8x64xbf16, #tpu.memory_space<vmem>>, vector<8x64xbf16>
      %cst_95 = arith.constant dense<0.000000e+00> : vector<8x64xf32>
      %162 = tpu.matmul %160, %161, %cst_95 {dimension_numbers = #tpu.dot_dimension_numbers<[1], [0], [0], [1], [0, 0, 1, 1], [], []>} : vector<8x8xbf16>, vector<8x64xbf16>, vector<8x64xf32> -> vector<8x64xf32>
      %163 = arith.addf %159, %162 : vector<8x64xf32>
      %164 = arith.truncf %128 : vector<8x512xf32> to vector<8x512xbf16>
      %c0_96 = arith.constant 0 : index
      %c0_97 = arith.constant 0 : index
      %165 = vector.load %arg19[%c0_96, %c0_97] : memref<512x64xbf16, #tpu.memory_space<vmem>>, vector<512x64xbf16>
      %cst_98 = arith.constant dense<0.000000e+00> : vector<8x64xf32>
      %166 = tpu.matmul %164, %165, %cst_98 {dimension_numbers = #tpu.dot_dimension_numbers<[1], [0], [0], [1], [0, 0, 1, 1], [], []>} : vector<8x512xbf16>, vector<512x64xbf16>, vector<8x64xf32> -> vector<8x64xf32>
      %c0_99 = arith.constant 0 : index
      %c0_100 = arith.constant 0 : index
      %167 = vector.load %arg20[%c0_99, %c0_100] : memref<1x64xf32, #tpu.memory_space<vmem>>, vector<1x64xf32>
      %168 = vector.broadcast %167 : vector<1x64xf32> to vector<8x64xf32>
      %169 = arith.addf %166, %168 : vector<8x64xf32>
      %170 = arith.addf %116, %163 : vector<8x64xf32>
      %171 = arith.addf %170, %169 : vector<8x64xf32>
      %cst_101 = arith.constant dense<0.000000e+00> : vector<8xf32>
      %172 = vector.multi_reduction <add>, %171, %cst_101 [1] : vector<8x64xf32> to vector<8xf32>
      %173 = vector.shape_cast %172 : vector<8xf32> to vector<8x1xf32>
      %cst_102 = arith.constant 6.400000e+01 : f32
      %174 = vector.broadcast %cst_102 : f32 to vector<8x1xf32>
      %175 = arith.divf %173, %174 : vector<8x1xf32>
      %176 = vector.broadcast %175 : vector<8x1xf32> to vector<8x64xf32>
      %177 = arith.subf %171, %176 : vector<8x64xf32>
      %178 = arith.mulf %177, %177 : vector<8x64xf32>
      %cst_103 = arith.constant dense<0.000000e+00> : vector<8xf32>
      %179 = vector.multi_reduction <add>, %178, %cst_103 [1] : vector<8x64xf32> to vector<8xf32>
      %180 = vector.shape_cast %179 : vector<8xf32> to vector<8x1xf32>
      %cst_104 = arith.constant 6.400000e+01 : f32
      %181 = vector.broadcast %cst_104 : f32 to vector<8x1xf32>
      %182 = arith.divf %180, %181 : vector<8x1xf32>
      %cst_105 = arith.constant 9.99999974E-6 : f32
      %183 = vector.broadcast %cst_105 : f32 to vector<8x1xf32>
      %184 = arith.addf %182, %183 : vector<8x1xf32>
      %185 = math.rsqrt %184 : vector<8x1xf32>
      %186 = vector.broadcast %185 : vector<8x1xf32> to vector<8x64xf32>
      %187 = arith.mulf %177, %186 : vector<8x64xf32>
      %c0_106 = arith.constant 0 : index
      %c0_107 = arith.constant 0 : index
      %188 = vector.load %arg21[%c0_106, %c0_107] : memref<1x64xf32, #tpu.memory_space<vmem>>, vector<1x64xf32>
      %189 = vector.broadcast %188 : vector<1x64xf32> to vector<8x64xf32>
      %190 = arith.mulf %187, %189 : vector<8x64xf32>
      %c0_108 = arith.constant 0 : index
      %c0_109 = arith.constant 0 : index
      %191 = vector.load %arg22[%c0_108, %c0_109] : memref<1x64xf32, #tpu.memory_space<vmem>>, vector<1x64xf32>
      %192 = vector.broadcast %191 : vector<1x64xf32> to vector<8x64xf32>
      %193 = arith.addf %190, %192 : vector<8x64xf32>
      %c0_110 = arith.constant 0 : index
      %c0_111 = arith.constant 0 : index
      %c0_112 = arith.constant 0 : index
      %194 = vector.load %arg23[%c0_110, %c0_111, %c0_112] : memref<1x8x64xf32, #tpu.memory_space<vmem>>, vector<1x8x64xf32>
      %195 = vector.shape_cast %194 : vector<1x8x64xf32> to vector<8x64xf32>
      %196 = vector.shape_cast %193 : vector<8x64xf32> to vector<1x8x64xf32>
      tpu.vector_store %arg23[%c0_110, %c0_111, %c0_112], %196 {strides = array<i32>} : memref<1x8x64xf32, #tpu.memory_space<vmem>>, vector<1x8x64xf32>,
    } else {
    }
    return
  }
  func.func @transform_0(%arg0: i32, %arg1: i32, %arg2: i32) -> (i32, i32, i32) {
    %c0_i32 = arith.constant 0 : i32
    %c0_i32_0 = arith.constant 0 : i32
    return %arg0, %arg1, %c0_i32 : i32, i32, i32
  }
  func.func @transform_1(%arg0: i32, %arg1: i32, %arg2: i32) -> (i32, i32, i32) {
    %c0_i32 = arith.constant 0 : i32
    %c0_i32_0 = arith.constant 0 : i32
    return %arg0, %arg2, %c0_i32 : i32, i32, i32
  }
  func.func @transform_2(%arg0: i32, %arg1: i32, %arg2: i32) -> (i32, i32, i32) {
    %c0_i32 = arith.constant 0 : i32
    %c0_i32_0 = arith.constant 0 : i32
    %c0_i32_1 = arith.constant 0 : i32
    %c0_i32_2 = arith.constant 0 : i32
    return %c0_i32, %c0_i32_0, %c0_i32_1 : i32, i32, i32
  }
  func.func @transform_3(%arg0: i32, %arg1: i32, %arg2: i32) -> (i32, i32, i32) {
    %c0_i32 = arith.constant 0 : i32
    %c0_i32_0 = arith.constant 0 : i32
    %c0_i32_1 = arith.constant 0 : i32
    %c0_i32_2 = arith.constant 0 : i32
    return %c0_i32, %c0_i32_0, %c0_i32_1 : i32, i32, i32
  }
  func.func @transform_4(%arg0: i32, %arg1: i32, %arg2: i32) -> (i32, i32, i32) {
    %c0_i32 = arith.constant 0 : i32
    %c0_i32_0 = arith.constant 0 : i32
    %c0_i32_1 = arith.constant 0 : i32
    %c0_i32_2 = arith.constant 0 : i32
    return %c0_i32, %c0_i32_0, %c0_i32_1 : i32, i32, i32
  }
  func.func @transform_5(%arg0: i32, %arg1: i32, %arg2: i32) -> (i32, i32, i32) {
    %c0_i32 = arith.constant 0 : i32
    %c0_i32_0 = arith.constant 0 : i32
    %c0_i32_1 = arith.constant 0 : i32
    %c0_i32_2 = arith.constant 0 : i32
    return %c0_i32, %c0_i32_0, %c0_i32_1 : i32, i32, i32
  }
  func.func @transform_6(%arg0: i32, %arg1: i32, %arg2: i32) -> (i32, i32, i32) {
    %c0_i32 = arith.constant 0 : i32
    %c0_i32_0 = arith.constant 0 : i32
    %c0_i32_1 = arith.constant 0 : i32
    %c0_i32_2 = arith.constant 0 : i32
    return %c0_i32, %c0_i32_0, %c0_i32_1 : i32, i32, i32
  }
  func.func @transform_7(%arg0: i32, %arg1: i32, %arg2: i32) -> (i32, i32, i32) {
    %c0_i32 = arith.constant 0 : i32
    %c0_i32_0 = arith.constant 0 : i32
    %c0_i32_1 = arith.constant 0 : i32
    %c0_i32_2 = arith.constant 0 : i32
    return %c0_i32, %c0_i32_0, %c0_i32_1 : i32, i32, i32
  }
  func.func @transform_8(%arg0: i32, %arg1: i32, %arg2: i32) -> (i32, i32, i32) {
    %c0_i32 = arith.constant 0 : i32
    %c0_i32_0 = arith.constant 0 : i32
    %c0_i32_1 = arith.constant 0 : i32
    %c0_i32_2 = arith.constant 0 : i32
    return %c0_i32, %c0_i32_0, %c0_i32_1 : i32, i32, i32
  }
  func.func @transform_9(%arg0: i32, %arg1: i32, %arg2: i32) -> (i32, i32) {
    %c0_i32 = arith.constant 0 : i32
    %c0_i32_0 = arith.constant 0 : i32
    %c0_i32_1 = arith.constant 0 : i32
    return %c0_i32, %c0_i32_0 : i32, i32
  }
  func.func @transform_10(%arg0: i32, %arg1: i32, %arg2: i32) -> (i32, i32) {
    %c0_i32 = arith.constant 0 : i32
    %c0_i32_0 = arith.constant 0 : i32
    %c0_i32_1 = arith.constant 0 : i32
    return %c0_i32, %c0_i32_0 : i32, i32
  }
  func.func @transform_11(%arg0: i32, %arg1: i32, %arg2: i32) -> (i32, i32) {
    %c0_i32 = arith.constant 0 : i32
    %c0_i32_0 = arith.constant 0 : i32
    %c0_i32_1 = arith.constant 0 : i32
    return %c0_i32, %c0_i32_0 : i32, i32
  }
  func.func @transform_12(%arg0: i32, %arg1: i32, %arg2: i32) -> (i32, i32) {
    %c0_i32 = arith.constant 0 : i32
    %c0_i32_0 = arith.constant 0 : i32
    %c0_i32_1 = arith.constant 0 : i32
    return %c0_i32, %c0_i32_0 : i32, i32
  }
  func.func @transform_13(%arg0: i32, %arg1: i32, %arg2: i32) -> (i32, i32) {
    %c0_i32 = arith.constant 0 : i32
    %c0_i32_0 = arith.constant 0 : i32
    %c0_i32_1 = arith.constant 0 : i32
    return %c0_i32, %c0_i32_0 : i32, i32
  }
  func.func @transform_14(%arg0: i32, %arg1: i32, %arg2: i32) -> (i32, i32) {
    %c0_i32 = arith.constant 0 : i32
    %c0_i32_0 = arith.constant 0 : i32
    %c0_i32_1 = arith.constant 0 : i32
    return %c0_i32, %c0_i32_0 : i32, i32
  }
  func.func @transform_15(%arg0: i32, %arg1: i32, %arg2: i32) -> (i32, i32) {
    %c0_i32 = arith.constant 0 : i32
    %c0_i32_0 = arith.constant 0 : i32
    %c0_i32_1 = arith.constant 0 : i32
    return %c0_i32, %c0_i32_0 : i32, i32
  }
  func.func @transform_16(%arg0: i32, %arg1: i32, %arg2: i32) -> (i32, i32) {
    %c0_i32 = arith.constant 0 : i32
    %c0_i32_0 = arith.constant 0 : i32
    %c0_i32_1 = arith.constant 0 : i32
    return %c0_i32, %c0_i32_0 : i32, i32
  }
  func.func @transform_17(%arg0: i32, %arg1: i32, %arg2: i32) -> (i32, i32) {
    %c0_i32 = arith.constant 0 : i32
    %c0_i32_0 = arith.constant 0 : i32
    %c0_i32_1 = arith.constant 0 : i32
    return %c0_i32, %c0_i32_0 : i32, i32
  }
  func.func @transform_18(%arg0: i32, %arg1: i32, %arg2: i32) -> (i32, i32) {
    %c0_i32 = arith.constant 0 : i32
    %c0_i32_0 = arith.constant 0 : i32
    %c0_i32_1 = arith.constant 0 : i32
    return %c0_i32, %c0_i32_0 : i32, i32
  }
  func.func @transform_19(%arg0: i32, %arg1: i32, %arg2: i32) -> (i32, i32) {
    %c0_i32 = arith.constant 0 : i32
    %c0_i32_0 = arith.constant 0 : i32
    %c0_i32_1 = arith.constant 0 : i32
    return %c0_i32, %c0_i32_0 : i32, i32
  }
  func.func @transform_20(%arg0: i32, %arg1: i32, %arg2: i32) -> (i32, i32, i32) {
    %c0_i32 = arith.constant 0 : i32
    %c0_i32_0 = arith.constant 0 : i32
    return %arg0, %arg1, %c0_i32 : i32, i32, i32
  }
}

</mosaic_0001>

<bundles_post_ra>
// kernel: flash_scgpt_layer.1
= control target key start
LH: loop header
LB: loop body
LE: loop exit
PB: predicated region body
PF: predicated region fallthrough
CT: control target
= control target key end

     0   :  { %s6013_s22 = smov 0   ;;  %s6015_s23 = smov 0   ;;  %s7208_s0 = inlined_call_operand.vmem [shape: f32[2,16,64], index: 0, kind: input, shape index: {}, may-alias: {0,1}]   ;;  %s7209_s1 = inlined_call_operand.vmem [shape: f32[2,16,64], index: 1, kind: input, shape index: {}, may-alias: {0,1}]   ;;  %s7210_s2 = inlined_call_operand.vmem [shape: bf16[4,64,16], index: 2, kind: input, shape index: {}]   ;;  %s7211_s3 = inlined_call_operand.vmem [shape: bf16[4,64,16], index: 3, kind: input, shape index: {}]   ;;  %s7212_s4 = inlined_call_operand.vmem [shape: bf16[4,64,16], index: 4, kind: input, shape index: {}]   ;;  %s7213_s5 = inlined_call_operand.vmem [shape: f32[4,1,16], index: 5, kind: input, shape index: {}]   ;;  %s7214_s6 = inlined_call_operand.vmem [shape: f32[4,1,16], index: 6, kind: input, shape index: {}]   ;;  %s7215_s7 = inlined_call_operand.vmem [shape: f32[4,1,16], index: 7, kind: input, shape index: {}]   ;;  %s7216_s8 = inlined_call_operand.vmem [shape: bf16[4,16,64], index: 8, kind: input, shape index: {}]   ;;  %s7217_s9 = inlined_call_operand.vmem [shape: f32[1,64], index: 9, kind: input, shape index: {}]   ;;  %s7218_s10 = inlined_call_operand.vmem [shape: f32[1,64], index: 10, kind: input, shape index: {}]   ;;  %s7219_s11 = inlined_call_operand.vmem [shape: f32[1,64], index: 11, kind: input, shape index: {}]   ;;  %s7220_s12 = inlined_call_operand.vmem [shape: bf16[64,1664], index: 12, kind: input, shape index: {}]   ;;  %s7221_s13 = inlined_call_operand.vmem [shape: f32[1,1664], index: 13, kind: input, shape index: {}]   ;;  %s7222_s14 = inlined_call_operand.vmem [shape: bf16[1024,64], index: 14, kind: input, shape index: {}]   ;;  %s7223_s15 = inlined_call_operand.vmem [shape: bf16[8,64], index: 15, kind: input, shape index: {}]   ;;  %s7224_s16 = inlined_call_operand.vmem [shape: bf16[512,64], index: 16, kind: input, shape index: {}]   ;;  %s7225_s17 = inlined_call_operand.vmem [shape: f32[1,64], index: 17, kind: input, shape index: {}]   ;;  %s7226_s18 = inlined_call_operand.vmem [shape: f32[1,64], index: 18, kind: input, shape index: {}]   ;;  %s7227_s19 = inlined_call_operand.vmem [shape: f32[1,64], index: 19, kind: input, shape index: {}]   ;;  %s7228_s20 = inlined_call_operand.vmem [shape: f32[2,16,64], index: 20, kind: output, shape index: {}]  }
   0x1   :  { %7238 = sst [smem:[#allocation12_spill]] %s7208_s0  ;;  %s6017_s24 = smov 0  }
   0x2   :  { %7239 = sst [smem:[#allocation13_spill]] %s7209_s1  ;;  %s6011_s1 = smov 0  }
   0x3   :  { %7240 = sst [smem:[#allocation14_spill]] %s7210_s2  ;;  %s6019_s2 = smov 0  }
   0x4   :  { %7241 = sst [smem:[#allocation15_spill]] %s7211_s3  ;;  %s6021_s25 = smov 0  }
   0x5   :  { %7242 = sst [smem:[#allocation16_spill]] %s7212_s4  ;;  %s6023_s3 = smov 0  }
   0x6   :  { %7243 = sst [smem:[#allocation17_spill]] %s7222_s14 }
   0x7   :  { %7244 = sst [smem:[#allocation18_spill]] %s7224_s16 }
   0x8   :  { %7245 = sst [smem:[#allocation19_spill]] %s7225_s17 }
   0x9   :  { %7246 = sst [smem:[#allocation20_spill]] %s7226_s18 }
   0xa   :  { %7247 = sst [smem:[#allocation21_spill]] %s7227_s19 }
   0xb LB: > { %7248 = sst [smem:[#allocation5_spill]] %s5882_s24  ;;  %s42_s26 = sadd.s32 1, %s5882_s24  ;;  %s5894_s3 = sphi %s6023_s3, %s30_s3   ;;  %s5890_s25 = sphi %s6021_s25, %s7271_s25   ;;  %s5886_s2 = sphi %s6019_s2, %s7270_s2   ;;  %s5882_s24 = sphi %s6017_s24, %s7269_s24   ;;  %s5878_s23 = sphi %s6015_s23, %s7268_s23   ;;  %s5874_s22 = sphi %s6013_s22, %s7267_s22   ;;  %s5870_s1 = sphi %s6011_s1, %s7266_s1  }
   0xc   : > { %7249 = sst [smem:[#allocation6_spill]] %s5886_s2  ;;  %p43_p0 = scmp.ge.s32.totalorder %s42_s26, 2 }
   0xd   : > { %7250 = sst [smem:[#allocation7_spill]] %s5890_s25  ;;  %s45_s27 = sadd.s32 1, %s5886_s2 }
   0xe   : > { %7251 = sst [smem:[#allocation8_spill]] %s5894_s3  ;;  %p4793_p1 = scmp.ge.s32.totalorder %s5894_s3, 1 }
   0xf   : > { %p603_p2 = scmp.lt.s32.totalorder %s5894_s3, 9  ;;  %s7273_s26 = smov (%p43_p0, %s42_s26), 0 }
  0x10   : > { %7252 = sst [smem:[#allocation9_spill]] %s7273_s26  ;;  %s7275_s27 = smov (!%p43_p0, %s45_s27), %s5886_s2 }
  0x11   : > { %p604_p3 = pnand %p4793_p1, %p603_p2  ;;  %p47_p4 = scmp.ge.s32.totalorder %s7275_s27, 2 }
  0x12   : > { %s49_s28 = sadd.s32 1, %s5890_s25  ;;  %p675_p6 = scmp.lt.s32.totalorder (!%p604_p3), %s5878_s23, 1 }
  0x13   : > { %s7277_s27 = smov (%p47_p4, %s7275_s27), 0  ;;  %s7279_s28 = smov (!%p47_p4, %s49_s28), %s5890_s25 }
  0x14   : > { %7253 = sst [smem:[#allocation10_spill]] %s7277_s27  ;;  %p51_p5 = scmp.ge.s32.totalorder %s7279_s28, 2 }
  0x15   : > { %607 = sbr.rel (%p604_p3) target bundleno = 3066 (0xbfa), region = 100  ;;  %p677_p7 = scmp.lt.s32.totalorder (!%p604_p3), %s5874_s22, 1 }
  0x16   : > { %s7281_s28 = smov (%p51_p5, %s7279_s28), 0  ;;  %p685_p8 = scmp.lt.s32.totalorder (!%p604_p3), %s5870_s1, 1 }
  0x17   : > { %7254 = sst [smem:[#allocation11_spill]] %s7281_s28  ;;  %p4800_p9 = scmp.ne.s32.totalorder (!%p604_p3), %s5870_s1, 0 }
  0x18   : > { %s7255_s27 = sld [smem:[#allocation12_spill]] (!%p604_p3) }
  0x19   : > { %s7256_s14 = sld [smem:[#allocation13_spill]] (!%p604_p3) }
  0x1a   : > { %s7283_s23 = smov (!%p675_p6, %s5878_s23), 1 }
  0x1b   : > { %s678_s4 = scalar_select %p677_p7, %s5874_s22, 1 }
  0x1c   : > { %s4794_s29 = sshll.u32 %s7283_s23, 1 }
  0x1d   : > { %s680_s30 = sadd.s32 %s4794_s29, %s678_s4 }
  0x1e   : > { %s4795_s0 = sshll.u32 %s680_s30, 3 }
  0x1f   : > { %s6063_s25 = scalar_lea.vmem %s7255_s27, %s4795_s0  ;;  %s6068_s24 = scalar_lea.vmem %s7228_s20, %s4795_s0 }
  0x20   : > { %s686_s3 = scalar_select %p685_p8, %s5870_s1, 1 }
  0x21   : > { %703 = sbr.rel (%p4800_p9) target bundleno = 45 (0x2d), region = 104 }
  0x22   : > { %s688_s19 = sadd.s32 %s4794_s29, %s686_s3 }
  0x23   : > { %s4797_s18 = sshll.u32 %s688_s19, 3 }
  0x24   : > { %s6074_s23 = scalar_lea.vmem %s7256_s14, %s4797_s18 }
  0x26   : > { %vm704_vm0 = vcmask 7168   ;;  %vm713_vm1 = vcmask 130048   ;;  %v5896_v0 = vmov -1e+30   ;;  %v5897_v1 = vmov 0.0  }
  0x27   : > { %705 = vst.msk [vmem:[#allocation2] sm:$0xff] %vm704_vm0, %v5896_v0  ;;  %706 = vst.msk [vmem:[#allocation2 + $0x8] sm:$0xff] %vm704_vm0, %v5896_v0 }
  0x28   : > { %707 = vst.msk [vmem:[#allocation2 + $0x10] sm:$0xff] %vm704_vm0, %v5896_v0  ;;  %708 = vst.msk [vmem:[#allocation2 + $0x18] sm:$0xff] %vm704_vm0, %v5896_v0 }
  0x29   : > { %709 = vst.msk [vmem:[#allocation3] sm:$0xff] %vm704_vm0, %v5897_v1  ;;  %710 = vst.msk [vmem:[#allocation3 + $0x8] sm:$0xff] %vm704_vm0, %v5897_v1 }
  0x2a   : > { %711 = vst.msk [vmem:[#allocation3 + $0x10] sm:$0xff] %vm704_vm0, %v5897_v1  ;;  %712 = vst.msk [vmem:[#allocation3 + $0x18] sm:$0xff] %vm704_vm0, %v5897_v1 }
  0x2b   : > { %714 = vst.msk [vmem:[#allocation4] sm:$0xff] %vm713_vm1, %v5897_v1  ;;  %715 = vst.msk [vmem:[#allocation4 + $0x8] sm:$0xff] %vm713_vm1, %v5897_v1 }
  0x2c   : > { %716 = vst.msk [vmem:[#allocation4 + $0x10] sm:$0xff] %vm713_vm1, %v5897_v1  ;;  %717 = vst.msk [vmem:[#allocation4 + $0x18] sm:$0xff] %vm713_vm1, %v5897_v1 }
  0x2d PF: > { %s7257_s17 = sld [smem:[#allocation14_spill]]  ;;  %v5898_v3 = vmov 0.0   ;;  %vm5899_vm2 = vmmov 0   ;;  %v718_v10 = vld [vmem:[%s6063_s25] sm:$0xff]  ;;  %vm806_vm3 = vcmask 523264   ;;  %vm1689_vm4 = vcmask 130048  }
  0x2e   : > { %5280 = vmatprep.subr.bf16.mxu0 %v5898_v3  ;;  %5292 = vmatprep.subr.bf16.mxu1 %v5898_v3  ;;  %v719_v12 = vpack.c.bf16 %v718_v10, %v718_v10  ;;  %s7258_s26 = sld [smem:[#allocation15_spill]]  ;;  %v720_v28 = vld [vmem:[%s6074_s23] sm:$0xff]  ;;  %vm2026_vm5 = vcmask 1043456   ;;  %vm1897_vm6 = vcmask 64512   ;;  %vm1986_vm7 = vcmask 7168   ;;  %s4877_s14 = sshll.u32 %s5874_s22, 3 }
  0x2f   : > { %5288 = vmatprep.mubr.msk.bf16.mxu0 %vm5899_vm2, %v5898_v3  ;;  %5300 = vmatprep.mubr.msk.bf16.mxu1 %vm5899_vm2, %v5898_v3  ;;  %v6191_v30 = vpack.c.bf16 %v720_v28, %v720_v28  ;;  %s7259_s30 = sld [smem:[#allocation16_spill]]  ;;  %s4878_s16 = sshll.u32 %s5870_s1, 3 }
  0x30   : > { %p4884_p10 = scmp.ne.s32.totalorder %s5870_s1, 1 }
  0x31   : > { %s7261_s28 = sld [smem:[#allocation18_spill]] (!%p4884_p10) }
  0x32   : > { %s7262_s18 = sld [smem:[#allocation19_spill]] (!%p4884_p10) }
  0x33   : > { %v5582_v2 = vld [vmem:[%s7257_s17 + $0x18] sm:$0xff]   ;;  %v5584_v5 = vld [vmem:[%s7257_s17 + $0x10] sm:$0xff]   ;;  %v5586_v7 = vld [vmem:[%s7257_s17 + $0x8] sm:$0xff]   ;;  %s7263_s2 = sld [smem:[#allocation20_spill]] (!%p4884_p10) }
  0x34   : > { %v5583_v4 = vld [vmem:[%s7257_s17 + $0x38] sm:$0xff]   ;;  %5281 = vmatpush3.bf16.msra.mxu0 %v5582_v2  ;;  %v5585_v6 = vld [vmem:[%s7257_s17 + $0x30] sm:$0xff]   ;;  %v5587_v8 = vld [vmem:[%s7257_s17 + $0x28] sm:$0xff]   ;;  %s7264_s4 = sld [smem:[#allocation21_spill]] (!%p4884_p10) }
  0x35   : > { %5293 = vmatpush3.bf16.msra.mxu1 %v5583_v4  ;;  %5282 = vmatprep.subr.bf16.mxu0 %v5898_v3  ;;  %v5588_v9 = vld [vmem:[%s7257_s17] sm:$0xff]   ;;  %v5590_v13 = vld [vmem:[%s7257_s17 + $0x58] sm:$0xff]   ;;  %v5592_v15 = vld [vmem:[%s7257_s17 + $0x50] sm:$0xff]  }
  0x36   : > { %5294 = vmatprep.subr.bf16.mxu1 %v5898_v3  ;;  %v5589_v11 = vld [vmem:[%s7257_s17 + $0x20] sm:$0xff]   ;;  %v5591_v14 = vld [vmem:[%s7257_s17 + $0x78] sm:$0xff]   ;;  %v5593_v16 = vld [vmem:[%s7257_s17 + $0x70] sm:$0xff]  }
  0x37   : > { %v5594_v17 = vld [vmem:[%s7257_s17 + $0x48] sm:$0xff]   ;;  %v5596_v19 = vld [vmem:[%s7257_s17 + $0x40] sm:$0xff]   ;;  %v5598_v21 = vld [vmem:[%s7258_s26 + $0x18] sm:$0xff]  }
  0x38   : > { %5283 = vmatpush3.bf16.msra.mxu0 %v5584_v5  ;;  %v5595_v18 = vld [vmem:[%s7257_s17 + $0x68] sm:$0xff]   ;;  %v5597_v20 = vld [vmem:[%s7257_s17 + $0x60] sm:$0xff]   ;;  %v5599_v22 = vld [vmem:[%s7258_s26 + $0x38] sm:$0xff]  }
  0x39   : > { %5295 = vmatpush3.bf16.msra.mxu1 %v5585_v6  ;;  %5284 = vmatprep.subr.bf16.mxu0 %v5898_v3  ;;  %v5600_v23 = vld [vmem:[%s7258_s26 + $0x10] sm:$0xff]   ;;  %v5602_v25 = vld [vmem:[%s7258_s26 + $0x8] sm:$0xff]   ;;  %v5604_v27 = vld [vmem:[%s7258_s26] sm:$0xff]  }
  0x3a   : > { %5296 = vmatprep.subr.bf16.mxu1 %v5898_v3  ;;  %v5601_v24 = vld [vmem:[%s7258_s26 + $0x30] sm:$0xff]   ;;  %v5603_v26 = vld [vmem:[%s7258_s26 + $0x28] sm:$0xff]   ;;  %v5605_v29 = vld [vmem:[%s7258_s26 + $0x20] sm:$0xff]  }
  0x3b   : > { %v5606_v31 = vld [vmem:[%s7258_s26 + $0x58] sm:$0xff]   ;;  %v5608_v33 = vld [vmem:[%s7258_s26 + $0x50] sm:$0xff]   ;;  %v5610_v35 = vld [vmem:[%s7258_s26 + $0x48] sm:$0xff]  }
  0x3c   : > { %5285 = vmatpush3.bf16.msra.mxu0 %v5586_v7  ;;  %v5607_v32 = vld [vmem:[%s7258_s26 + $0x78] sm:$0xff]   ;;  %v5609_v34 = vld [vmem:[%s7258_s26 + $0x70] sm:$0xff]   ;;  %v5611_v36 = vld [vmem:[%s7258_s26 + $0x68] sm:$0xff]  }
  0x3d   : > { %5297 = vmatpush3.bf16.msra.mxu1 %v5587_v8  ;;  %5286 = vmatprep.subr.bf16.mxu0 %v5898_v3  ;;  %v5612_v37 = vld [vmem:[%s7258_s26 + $0x40] sm:$0xff]   ;;  %v5614_v39 = vld [vmem:[%s7259_s30 + $0x18] sm:$0xff]   ;;  %v5616_v41 = vld [vmem:[%s7259_s30 + $0x10] sm:$0xff]  }
  0x3e   : > { %5298 = vmatprep.subr.bf16.mxu1 %v5898_v3  ;;  %v5613_v38 = vld [vmem:[%s7258_s26 + $0x60] sm:$0xff]   ;;  %v5615_v40 = vld [vmem:[%s7259_s30 + $0x38] sm:$0xff]   ;;  %v5617_v42 = vld [vmem:[%s7259_s30 + $0x30] sm:$0xff]  }
  0x3f   : > { %v5618_v43 = vld [vmem:[%s7259_s30 + $0x8] sm:$0xff]   ;;  %v5620_v45 = vld [vmem:[%s7259_s30] sm:$0xff]   ;;  %v5622_v47 = vld [vmem:[%s7259_s30 + $0x58] sm:$0xff]  }
  0x40   : > { %5287 = vmatpush3.bf16.msra.mxu0 %v5588_v9  ;;  %v5619_v44 = vld [vmem:[%s7259_s30 + $0x28] sm:$0xff]   ;;  %v5621_v46 = vld [vmem:[%s7259_s30 + $0x20] sm:$0xff]   ;;  %v5623_v48 = vld [vmem:[%s7259_s30 + $0x78] sm:$0xff]  }
  0x41   : > { %5299 = vmatpush3.bf16.msra.mxu1 %v5589_v11  ;;  %5304 = vmatprep.subr.bf16.mxu0 %v5898_v3  ;;  %v5624_v49 = vld [vmem:[%s7259_s30 + $0x50] sm:$0xff]   ;;  %v5626_v51 = vld [vmem:[%s7259_s30 + $0x48] sm:$0xff]   ;;  %v5628_v53 = vld [vmem:[%s7259_s30 + $0x40] sm:$0xff]  }
  0x42   : > { %5316 = vmatprep.subr.bf16.mxu1 %v5898_v3  ;;  %v5625_v50 = vld [vmem:[%s7259_s30 + $0x70] sm:$0xff]   ;;  %v5627_v52 = vld [vmem:[%s7259_s30 + $0x68] sm:$0xff]   ;;  %v5629_v54 = vld [vmem:[%s7259_s30 + $0x60] sm:$0xff]  }
  0x43   : > { %5289 = vmatmul.mubr.msk.bf16.vlgmr.msra.gmra.mxu0 %vm806_vm3, %v719_v12  ;;  %v4825_v8 = vld [vmem:[%s7214_s6] ss:$0 sm:$0xff]  ;;  %v4826_v9 = vld [vmem:[%s7214_s6 + $0x1] ss:$0 sm:$0xff] }
  0x44   : > { %5301 = vmatmul.mubr.msk.bf16.vlgmr.msra.gmra.mxu1 %vm806_vm3, %v719_v12  ;;  %5305 = vmatpush3.bf16.msra.mxu0 %v5590_v13 }
  0x45   : > { %5317 = vmatpush3.bf16.msra.mxu1 %v5591_v14  ;;  %5306 = vmatprep.subr.bf16.mxu0 %v5898_v3 }
  0x46   : > { %5318 = vmatprep.subr.bf16.mxu1 %v5898_v3  ;;  %5312 = vmatprep.mubr.msk.bf16.mxu0 %vm5899_vm2, %v5898_v3 }
  0x47   : > { %5324 = vmatprep.mubr.msk.bf16.mxu1 %vm5899_vm2, %v5898_v3 }
  0x48   : > { %5307 = vmatpush3.bf16.msra.mxu0 %v5592_v15 }
  0x49   : > { %5319 = vmatpush3.bf16.msra.mxu1 %v5593_v16  ;;  %5308 = vmatprep.subr.bf16.mxu0 %v5898_v3 }
  0x4a   : > { %5320 = vmatprep.subr.bf16.mxu1 %v5898_v3 }
  0x4c   : > { %5309 = vmatpush3.bf16.msra.mxu0 %v5594_v17  ;;  %v4801_v17 = vld [vmem:[%s7213_s5] ss:$0 sm:$0xff] }
  0x4d   : > { %5321 = vmatpush3.bf16.msra.mxu1 %v5595_v18  ;;  %5310 = vmatprep.subr.bf16.mxu0 %v5898_v3 }
  0x4e   : > { %5322 = vmatprep.subr.bf16.mxu1 %v5898_v3 }
  0x50   : > { %5311 = vmatpush3.bf16.msra.mxu0 %v5596_v19 }
  0x51   : > { %5323 = vmatpush3.bf16.msra.mxu1 %v5597_v20  ;;  %5328 = vmatprep.subr.bf16.mxu0 %v5898_v3  ;;  %v4802_v20 = vld [vmem:[%s7213_s5 + $0x1] ss:$0 sm:$0xff] }
  0x52   : > { %5340 = vmatprep.subr.bf16.mxu1 %v5898_v3 }
  0x53   : > { %5313 = vmatmul.mubr.msk.bf16.vlgmr.msra.gmra.mxu0 %vm806_vm3, %v719_v12 }
  0x54   : > { %5325 = vmatmul.mubr.msk.bf16.vlgmr.msra.gmra.mxu1 %vm806_vm3, %v719_v12  ;;  %5329 = vmatpush3.bf16.msra.mxu0 %v5598_v21 }
  0x55   : > { %5341 = vmatpush3.bf16.msra.mxu1 %v5599_v22  ;;  %5330 = vmatprep.subr.bf16.mxu0 %v5898_v3 }
  0x56   : > { %5342 = vmatprep.subr.bf16.mxu1 %v5898_v3  ;;  %5336 = vmatprep.mubr.msk.bf16.mxu0 %vm5899_vm2, %v5898_v3 }
  0x57   : > { %5348 = vmatprep.mubr.msk.bf16.mxu1 %vm5899_vm2, %v5898_v3 }
  0x58   : > { %5331 = vmatpush3.bf16.msra.mxu0 %v5600_v23 }
  0x59   : > { %5343 = vmatpush3.bf16.msra.mxu1 %v5601_v24  ;;  %5332 = vmatprep.subr.bf16.mxu0 %v5898_v3 }
  0x5a   : > { %5344 = vmatprep.subr.bf16.mxu1 %v5898_v3 }
  0x5c   : > { %5333 = vmatpush3.bf16.msra.mxu0 %v5602_v25 }
  0x5d   : > { %5345 = vmatpush3.bf16.msra.mxu1 %v5603_v26  ;;  %5334 = vmatprep.subr.bf16.mxu0 %v5898_v3 }
  0x5e   : > { %5346 = vmatprep.subr.bf16.mxu1 %v5898_v3 }
  0x60   : > { %5335 = vmatpush3.bf16.msra.mxu0 %v5604_v27 }
  0x61   : > { %5347 = vmatpush3.bf16.msra.mxu1 %v5605_v29  ;;  %5352 = vmatprep.subr.bf16.mxu0 %v5898_v3 }
  0x62   : > { %5364 = vmatprep.subr.bf16.mxu1 %v5898_v3 }
  0x63   : > { %5337 = vmatmul.mubr.msk.bf16.vlgmr.msra.gmra.mxu0 %vm806_vm3, %v6191_v30 }
  0x64   : > { %5349 = vmatmul.mubr.msk.bf16.vlgmr.msra.gmra.mxu1 %vm806_vm3, %v6191_v30  ;;  %5353 = vmatpush3.bf16.msra.mxu0 %v5606_v31  ;;  %v4828_v31 = vld [vmem:[%s7214_s6 + $0x3] ss:$0 sm:$0xff] }
  0x65   : > { %5365 = vmatpush3.bf16.msra.mxu1 %v5607_v32  ;;  %5354 = vmatprep.subr.bf16.mxu0 %v5898_v3 }
  0x66   : > { %5366 = vmatprep.subr.bf16.mxu1 %v5898_v3  ;;  %5360 = vmatprep.mubr.msk.bf16.mxu0 %vm5899_vm2, %v5898_v3 }
  0x67   : > { %5372 = vmatprep.mubr.msk.bf16.mxu1 %vm5899_vm2, %v5898_v3 }
  0x68   : > { %5355 = vmatpush3.bf16.msra.mxu0 %v5608_v33 }
  0x69   : > { %5367 = vmatpush3.bf16.msra.mxu1 %v5609_v34  ;;  %5356 = vmatprep.subr.bf16.mxu0 %v5898_v3 }
  0x6a   : > { %5368 = vmatprep.subr.bf16.mxu1 %v5898_v3 }
  0x6c   : > { %5357 = vmatpush3.bf16.msra.mxu0 %v5610_v35 }
  0x6d   : > { %5369 = vmatpush3.bf16.msra.mxu1 %v5611_v36  ;;  %5358 = vmatprep.subr.bf16.mxu0 %v5898_v3 }
  0x6e   : > { %5370 = vmatprep.subr.bf16.mxu1 %v5898_v3 }
  0x70   : > { %5359 = vmatpush3.bf16.msra.mxu0 %v5612_v37 }
  0x71   : > { %5371 = vmatpush3.bf16.msra.mxu1 %v5613_v38  ;;  %5376 = vmatprep.subr.bf16.mxu0 %v5898_v3 }
  0x72   : > { %5388 = vmatprep.subr.bf16.mxu1 %v5898_v3 }
  0x73   : > { %5361 = vmatmul.mubr.msk.bf16.vlgmr.msra.gmra.mxu0 %vm806_vm3, %v6191_v30 }
  0x74   : > { %5373 = vmatmul.mubr.msk.bf16.vlgmr.msra.gmra.mxu1 %vm806_vm3, %v6191_v30  ;;  %5384 = vmatprep.mubr.msk.bf16.mxu0 %vm5899_vm2, %v5898_v3 }
  0x75   : > { %5396 = vmatprep.mubr.msk.bf16.mxu1 %vm5899_vm2, %v5898_v3  ;;  %5377 = vmatpush3.bf16.msra.mxu0 %v5614_v39  ;;  %v4803_v39 = vld [vmem:[%s7213_s5 + $0x2] ss:$0 sm:$0xff] }
  0x76   : > { %5389 = vmatpush3.bf16.msra.mxu1 %v5615_v40  ;;  %5378 = vmatprep.subr.bf16.mxu0 %v5898_v3 }
  0x77   : > { %5390 = vmatprep.subr.bf16.mxu1 %v5898_v3 }
  0x79   : > { %5379 = vmatpush3.bf16.msra.mxu0 %v5616_v41 }
  0x7a   : > { %5391 = vmatpush3.bf16.msra.mxu1 %v5617_v42  ;;  %5380 = vmatprep.subr.bf16.mxu0 %v5898_v3  ;;  %v4804_v42 = vld [vmem:[%s7213_s5 + $0x3] ss:$0 sm:$0xff] }
  0x7b   : > { %5392 = vmatprep.subr.bf16.mxu1 %v5898_v3 }
  0x7d   : > { %5381 = vmatpush3.bf16.msra.mxu0 %v5618_v43 }
  0x7e   : > { %5393 = vmatpush3.bf16.msra.mxu1 %v5619_v44  ;;  %5382 = vmatprep.subr.bf16.mxu0 %v5898_v3 }
  0x7f   : > { %5394 = vmatprep.subr.bf16.mxu1 %v5898_v3 }
  0x81   : > { %5383 = vmatpush3.bf16.msra.mxu0 %v5620_v45 }
  0x82   : > { %5395 = vmatpush3.bf16.msra.mxu1 %v5621_v46  ;;  %5400 = vmatprep.subr.bf16.mxu0 %v5898_v3 }
  0x83   : > { %5412 = vmatprep.subr.bf16.mxu1 %v5898_v3 }
  0x84   : > { %5385 = vmatmul.mubr.msk.bf16.vlgmr.msra.gmra.mxu0 %vm806_vm3, %v6191_v30 }
  0x85   : > { %5397 = vmatmul.mubr.msk.bf16.vlgmr.msra.gmra.mxu1 %vm806_vm3, %v6191_v30  ;;  %5401 = vmatpush3.bf16.msra.mxu0 %v5622_v47 }
  0x86   : > { %5413 = vmatpush3.bf16.msra.mxu1 %v5623_v48  ;;  %5402 = vmatprep.subr.bf16.mxu0 %v5898_v3 }
  0x87   : > { %5414 = vmatprep.subr.bf16.mxu1 %v5898_v3  ;;  %5408 = vmatprep.mubr.msk.bf16.mxu0 %vm5899_vm2, %v5898_v3 }
  0x88   : > { %5420 = vmatprep.mubr.msk.bf16.mxu1 %vm5899_vm2, %v5898_v3 }
  0x89   : > { %5403 = vmatpush3.bf16.msra.mxu0 %v5624_v49 }
  0x8a   : > { %5415 = vmatpush3.bf16.msra.mxu1 %v5625_v50  ;;  %5404 = vmatprep.subr.bf16.mxu0 %v5898_v3 }
  0x8b   : > { %5416 = vmatprep.subr.bf16.mxu1 %v5898_v3 }
  0x8d   : > { %5405 = vmatpush3.bf16.msra.mxu0 %v5626_v51 }
  0x8e   : > { %5417 = vmatpush3.bf16.msra.mxu1 %v5627_v52  ;;  %5406 = vmatprep.subr.bf16.mxu0 %v5898_v3  ;;  %v4849_v52 = vld [vmem:[%s7215_s7] ss:$0 sm:$0xff] }
  0x8f   : > { %5418 = vmatprep.subr.bf16.mxu1 %v5898_v3 }
  0x91   : > { %5407 = vmatpush3.bf16.msra.mxu0 %v5628_v53  ;;  %v4850_v53 = vld [vmem:[%s7215_s7 + $0x1] ss:$0 sm:$0xff] }
  0x92   : > { %5419 = vmatpush3.bf16.msra.mxu1 %v5629_v54  ;;  %5424 = vmatprep.subr.bf16.mxu0 %v5898_v3 }
  0x93   : > { %5430 = vmatprep.subr.bf16.mxu1 %v5898_v3 }
  0x94   : > { %5409 = vmatmul.mubr.msk.bf16.vlgmr.msra.gmra.mxu0 %vm806_vm3, %v6191_v30 }
  0x95   : > { %5421 = vmatmul.mubr.msk.bf16.vlgmr.msra.gmra.mxu1 %vm806_vm3, %v6191_v30  ;;  %5426 = vmatprep.mubr.msk.bf16.mxu0 %vm5899_vm2, %v5898_v3  ;;  %v4827_v30 = vld [vmem:[%s7214_s6 + $0x2] ss:$0 sm:$0xff] }
  0x96   : > { %5432 = vmatprep.mubr.msk.bf16.mxu1 %vm5899_vm2, %v5898_v3 }
 0x103   : > { %v844_v55 = vpop.f32.mrf.mxu0 }
 0x104   : > { %v908_v56 = vpop.f32.mrf.mxu1  ;;  %v845_v25 = vadd.f32 %v4801_v17, %v844_v55 }
 0x105   : > { %v5290_v57 = vpop.f32.mrf.mxu0  ;;  %v909_v27 = vadd.f32 %v4802_v20, %v908_v56 }
 0x106   : > { %v5302_v58 = vpop.f32.mrf.mxu1  ;;  %v1042_v28 = vpack.c.bf16 %v845_v25, %v845_v25 }
 0x107   : > { %v847_v59 = vpop.f32.mrf.mxu0  ;;  %v1043_v29 = vpack.c.bf16 %v909_v27, %v909_v27 }
 0x108   : > { %v911_v60 = vpop.f32.mrf.mxu1 }
 0x109   : > { %v5291_v61 = vpop.f32.mrf.mxu0 }
 0x10a   : > { %v5303_v62 = vpop.f32.mrf.mxu1 }
 0x113   : > { %v972_v63 = vpop.f32.mrf.mxu0 }
 0x114   : > { %v1036_v0 = vpop.f32.mrf.mxu1  ;;  %v973_v47 = vadd.f32 %v4803_v39, %v972_v63 }
 0x115   : > { %v5314_v1 = vpop.f32.mrf.mxu0  ;;  %v1037_v49 = vadd.f32 %v4804_v42, %v1036_v0  ;;  %v1893_v42 = vld [vmem:[#allocation2] sm:$0xff] }
 0x116   : > { %v5326_v2 = vpop.f32.mrf.mxu1  ;;  %v1044_v50 = vpack.c.bf16 %v973_v47, %v973_v47 }
 0x117   : > { %v975_v4 = vpop.f32.mrf.mxu0  ;;  %v1045_v51 = vpack.c.bf16 %v1037_v49, %v1037_v49 }
 0x118   : > { %v1039_v5 = vpop.f32.mrf.mxu1 }
 0x119   : > { %v5315_v6 = vpop.f32.mrf.mxu0  ;;  %v4851_v5 = vld [vmem:[%s7215_s7 + $0x2] ss:$0 sm:$0xff] }
 0x11a   : > { %v5327_v7 = vpop.f32.mrf.mxu1  ;;  %v4852_v6 = vld [vmem:[%s7215_s7 + $0x3] ss:$0 sm:$0xff] }
 0x123   : > { %v1167_v10 = vpop.f32.mrf.mxu0 }
 0x124   : > { %v1168_v11 = vadd.f32 %v4825_v8, %v1167_v10  ;;  %v1231_v12 = vpop.f32.mrf.mxu1 }
 0x125   : > { %v1232_v13 = vadd.f32 %v4826_v9, %v1231_v12  ;;  %v5338_v14 = vpop.f32.mrf.mxu0 }
 0x126   : > { %v1365_v15 = vpack.c.bf16 %v1168_v11, %v1168_v11  ;;  %v5350_v16 = vpop.f32.mrf.mxu1 }
 0x127   : > { %v1366_v18 = vpack.c.bf16 %v1232_v13, %v1232_v13  ;;  %v1170_v19 = vpop.f32.mrf.mxu0 }
 0x128   : > { %v1694_v21 = vsel %vm1689_vm4, %v1365_v15, 0  ;;  %v1234_v22 = vpop.f32.mrf.mxu1 }
 0x129   : > { %v1740_v23 = vsel %vm1689_vm4, %v1366_v18, 0  ;;  %v5339_v24 = vpop.f32.mrf.mxu0  ;;  %5425 = vmatpush3.bf16.xpose.msra.mxu0 %v1694_v21 }
 0x12a   : > { %v5351_v26 = vpop.f32.mrf.mxu1  ;;  %5431 = vmatpush3.bf16.xpose.msra.mxu1 %v1740_v23  ;;  %5436 = vmatprep.subr.bf16.mxu0 %v5898_v3 }
 0x12b   : > { %5442 = vmatprep.subr.bf16.mxu1 %v5898_v3 }
 0x130   : > { %5427 = vmatmul.mubr.msk.bf16.vlgmr.msra.gmra.mxu0 %vm1689_vm4, %v1042_v28 }
 0x131   : > { %5433 = vmatmul.mubr.msk.bf16.vlgmr.msra.gmra.mxu1 %vm1689_vm4, %v1043_v29  ;;  %5438 = vmatprep.mubr.msk.bf16.mxu0 %vm5899_vm2, %v5898_v3 }
 0x132   : > { %5444 = vmatprep.mubr.msk.bf16.mxu1 %vm5899_vm2, %v5898_v3 }
 0x133   : > { %v1295_v32 = vpop.f32.mrf.mxu0 }
 0x134   : > { %v1296_v33 = vadd.f32 %v4827_v30, %v1295_v32  ;;  %v1359_v34 = vpop.f32.mrf.mxu1 }
 0x135   : > { %v1360_v35 = vadd.f32 %v4828_v31, %v1359_v34  ;;  %v5362_v36 = vpop.f32.mrf.mxu0  ;;  %v5900_v31 = vmov 0  }
 0x136   : > { %v1367_v37 = vpack.c.bf16 %v1296_v33, %v1296_v33  ;;  %v5374_v38 = vpop.f32.mrf.mxu1  ;;  %5580 = vset.pattern.permute.xlu0 %v5900_v31  ;;  %5581 = vset.pattern.permute.xlu1 %v5900_v31 }
 0x137   : > { %v1368_v40 = vpack.c.bf16 %v1360_v35, %v1360_v35  ;;  %v1298_v41 = vpop.f32.mrf.mxu0 }
 0x138   : > { %v1786_v43 = vsel %vm1689_vm4, %v1367_v37, 0  ;;  %v1362_v44 = vpop.f32.mrf.mxu1 }
 0x139   : > { %v1832_v45 = vsel %vm1689_vm4, %v1368_v40, 0  ;;  %v5363_v46 = vpop.f32.mrf.mxu0  ;;  %5437 = vmatpush3.bf16.xpose.msra.mxu0 %v1786_v43 }
 0x13a   : > { %v5375_v48 = vpop.f32.mrf.mxu1  ;;  %5443 = vmatpush3.bf16.xpose.msra.mxu1 %v1832_v45  ;;  %5448 = vmatprep.subr.bf16.mxu0 %v5898_v3  ;;  %v6405_v45 = vld [vmem:[#allocation2 + $0x8] sm:$0xff] }
 0x13b   : > { %5454 = vmatprep.subr.bf16.mxu1 %v5898_v3 }
 0x140   : > { %5439 = vmatmul.mubr.msk.bf16.vlgmr.msra.gmra.mxu0 %vm1689_vm4, %v1044_v50 }
 0x141   : > { %5445 = vmatmul.mubr.msk.bf16.vlgmr.msra.gmra.mxu1 %vm1689_vm4, %v1045_v51  ;;  %5450 = vmatprep.mubr.msk.bf16.mxu0 %vm5899_vm2, %v5898_v3  ;;  %v1895_v51 = vld [vmem:[#allocation2 + $0x10] sm:$0xff] }
 0x142   : > { %5456 = vmatprep.mubr.msk.bf16.mxu1 %vm5899_vm2, %v5898_v3 }
 0x144   : > { %v1487_v54 = vpop.f32.mrf.mxu0 }
 0x145   : > { %v1551_v55 = vpop.f32.mrf.mxu1  ;;  %v1488_v56 = vadd.f32 %v4849_v52, %v1487_v54  ;;  %v6416_v54 = vld [vmem:[#allocation2 + $0x18] sm:$0xff] }
 0x146   : > { %v1552_v57 = vadd.f32 %v4850_v53, %v1551_v55  ;;  %v5386_v58 = vpop.f32.mrf.mxu0 }
 0x147   : > { %v5398_v59 = vpop.f32.mrf.mxu1  ;;  %v1685_v60 = vpack.c.bf16 %v1488_v56, %v1488_v56 }
 0x148   : > { %v1686_v61 = vpack.c.bf16 %v1552_v57, %v1552_v57  ;;  %v1490_v62 = vpop.f32.mrf.mxu0 }
 0x149   : > { %v1554_v63 = vpop.f32.mrf.mxu1  ;;  %v2028_v0 = vsel %vm2026_vm5, %v1685_v60, 0  ;;  %v1875_v60 = vlaneseq }
 0x14a   : > { %v2074_v1 = vsel %vm2026_vm5, %v1686_v61, 0  ;;  %v5387_v2 = vpop.f32.mrf.mxu0  ;;  %5449 = vmatpush3.bf16.msra.mxu0 %v2028_v0 }
 0x14b   : > { %v5399_v4 = vpop.f32.mrf.mxu1  ;;  %5455 = vmatpush3.bf16.msra.mxu1 %v2074_v1  ;;  %5460 = vmatprep.subr.bf16.mxu0 %v5898_v3  ;;  %v6433_v63 = vshrl.u32 %v1875_v60, 7  ;;  %v6435_v0 = vand.u32 127, %v1875_v60  ;;  %v1877_v2 = vstv %s4877_s14  ;;  %s7260_s14 = sld [smem:[#allocation17_spill]] (!%p4884_p10) }
 0x14c   : > { %5466 = vmatprep.subr.bf16.mxu1 %v5898_v3  ;;  %v1882_v4 = vstv %s4878_s16 }
 0x154   : > { %v1615_v7 = vpop.f32.mrf.mxu0 }
 0x155   : > { %v1679_v8 = vpop.f32.mrf.mxu1  ;;  %v1616_v9 = vadd.f32 %v4851_v5, %v1615_v7  ;;  %v1878_v7 = vadd.s32 %v1877_v2, %v6433_v63 }
 0x156   : > { %v1680_v10 = vadd.f32 %v4852_v6, %v1679_v8  ;;  %v5410_v11 = vpop.f32.mrf.mxu0  ;;  %v1883_v8 = vadd.s32 %v1882_v4, %v6435_v0 }
 0x157   : > { %v5422_v12 = vpop.f32.mrf.mxu1  ;;  %v1687_v13 = vpack.c.bf16 %v1616_v9, %v1616_v9  ;;  %vm1885_vm9 = vcmp.ge.s32.totalorder %v1878_v7, 8 }
 0x158   : > { %v1688_v14 = vpack.c.bf16 %v1680_v10, %v1680_v10  ;;  %v1618_v15 = vpop.f32.mrf.mxu0  ;;  %vm1884_vm8 = vcmp.lt.s32.totalorder %v1883_v8, 8 }
 0x159   : > { %v1682_v16 = vpop.f32.mrf.mxu1  ;;  %v6384_v17 = vsel %vm2026_vm5, %v1687_v13, 0  ;;  %vm1890_vm10 = vmor %vm1884_vm8, %vm1885_vm9 }
 0x15a   : > { %v6387_v18 = vsel %vm2026_vm5, %v1688_v14, 0  ;;  %v5411_v19 = vpop.f32.mrf.mxu0  ;;  %v4879_v11 = vsel %vm1890_vm10, 1.0, %v5898_v3 }
 0x15b   : > { %v5423_v20 = vpop.f32.mrf.mxu1 }
 0x1f0   : > { %v6389_v21 = vpop.f32.mrf.mxu0 }
 0x1f1   : > { %v6391_v22 = vpop.f32.mrf.mxu1  ;;  %v1898_v23 = vsel %vm1897_vm6, %v6389_v21, -inf }
 0x1f2   : > { %1899 = vmax.xlane.f32.xlu0 %v1898_v23  ;;  %v5428_v24 = vpop.f32.mrf.mxu0  ;;  %v1901_v28 = vsel %vm1897_vm6, %v6391_v22, -inf }
 0x1f3   : > { %v5434_v25 = vpop.f32.mrf.mxu1 }
 0x1f4   : > { %v1733_v26 = vpop.f32.mrf.mxu0 }
 0x1f5   : > { %v1779_v27 = vpop.f32.mrf.mxu1 }
 0x1f6   : > { %1902 = vmax.xlane.f32.xlu0 %v1901_v28  ;;  %v5429_v29 = vpop.f32.mrf.mxu0 }
 0x1f7   : > { %v5435_v30 = vpop.f32.mrf.mxu1 }
 0x200   : > { %v6397_v32 = vpop.f32.mrf.mxu0 }
 0x201   : > { %v6399_v33 = vpop.f32.mrf.mxu1  ;;  %v1904_v34 = vsel %vm1897_vm6, %v6397_v32, -inf }
 0x202   : > { %1905 = vmax.xlane.f32.xlu1 %v1904_v34  ;;  %v5440_v35 = vpop.f32.mrf.mxu0  ;;  %v1907_v39 = vsel %vm1897_vm6, %v6399_v33, -inf }
 0x203   : > { %v5446_v36 = vpop.f32.mrf.mxu1 }
 0x204   : > { %v1825_v37 = vpop.f32.mrf.mxu0 }
 0x205   : > { %v1871_v38 = vpop.f32.mrf.mxu1 }
 0x206   : > { %1908 = vmax.xlane.f32.xlu1 %v1907_v39  ;;  %v5441_v40 = vpop.f32.mrf.mxu0  ;;  %v1962_v39 = vld [vmem:[#allocation3] sm:$0xff] }
 0x207   : > { %v5447_v41 = vpop.f32.mrf.mxu1 }
 0x27b   : > { %v1900_v43 = vpop.xlane.xlu0 %1899 }
 0x27c   : > { %v1910_v44 = vmax.f32 %v1893_v42, %v1900_v43 }
 0x27e   : > { %2216 = vst.msk [vmem:[#allocation2] sm:$0xff] %vm1986_vm7, %v1910_v44  ;;  %1916 = vperm.xlu0 %5580, %v1910_v44   ;;  %v1950_v47 = vsub.f32 %v1893_v42, %v1910_v44  ;;  %v1963_v42 = vld [vmem:[#allocation3 + $0x8] sm:$0xff] }
 0x27f   : > { %v1903_v46 = vpop.xlane.xlu0 %1902 }
 0x280   : > { %v6409_v48 = vmax.f32 %v6405_v45, %v1903_v46  ;;  %v1954_v50 = vmul.f32 1.442695, %v1950_v47 }
 0x282   : > { %v1951_v49 = vsub.f32 %v6405_v45, %v6409_v48  ;;  %2217 = vst.msk [vmem:[#allocation2 + $0x8] sm:$0xff] %vm1986_vm7, %v6409_v48  ;;  %1921 = vperm.xlu1 %5581, %v6409_v48   ;;  %5630 = vpow2.f32 %v1954_v50  ;;  %v1964_v48 = vld [vmem:[#allocation3 + $0x10] sm:$0xff] }
 0x284   : > { %v1956_v28 = vmul.f32 1.442695, %v1951_v49  ;;  %v1991_v49 = vld [vmem:[#allocation4] sm:$0xff] }
 0x28b   : > { %v1906_v52 = vpop.xlane.xlu1 %1905 }
 0x28c   : > { %v1912_v53 = vmax.f32 %v1895_v51, %v1906_v52  ;;  %v1965_v52 = vld [vmem:[#allocation3 + $0x18] sm:$0xff] }
 0x28e   : > { %v1952_v55 = vsub.f32 %v1895_v51, %v1912_v53  ;;  %2218 = vst.msk [vmem:[#allocation2 + $0x10] sm:$0xff] %vm1986_vm7, %v1912_v53  ;;  %1926 = vperm.xlu1 %5581, %v1912_v53  }
 0x28f   : > { %v1909_v56 = vpop.xlane.xlu1 %1908  ;;  %v6427_v59 = vpop.eup %5630 }
 0x290   : > { %v6420_v57 = vmax.f32 %v6416_v54, %v1909_v56  ;;  %v1958_v16 = vmul.f32 1.442695, %v1952_v55  ;;  %v1966_v40 = vmul.f32 %v6427_v59, %v1962_v39  ;;  %v1992_v55 = vld [vmem:[#allocation4 + $0x8] sm:$0xff] }
 0x292   : > { %v1953_v58 = vsub.f32 %v6416_v54, %v6420_v57  ;;  %2219 = vst.msk [vmem:[#allocation2 + $0x18] sm:$0xff] %vm1986_vm7, %v6420_v57  ;;  %1931 = vperm.xlu1 %5581, %v6420_v57  }
 0x294   : > { %v1960_v35 = vmul.f32 1.442695, %v1953_v58 }
 0x296   : > { %1997 = vperm.xlu1 %5581, %v6427_v59  }
 0x2f9   : > { %v1917_v61 = vpop.permute.xlu0 %1916 }
 0x2fa   : > { %v1934_v62 = vsub.f32 %v6389_v21, %v1917_v61 }
 0x2fc   : > { %v1938_v1 = vmul.f32 1.442695, %v1934_v62 }
 0x2fd   : > { %v1922_v5 = vpop.permute.xlu1 %1921 }
 0x2fe   : > { %5632 = vpow2.f32 %v1938_v1  ;;  %v1935_v6 = vsub.f32 %v6391_v22, %v1922_v5 }
 0x300   : > { %v1940_v9 = vmul.f32 1.442695, %v1935_v6 }
 0x302   : > { %5634 = vpow2.f32 %v1940_v9 }
 0x309   : > { %v1927_v10 = vpop.permute.xlu1 %1926 }
 0x30a   : > { %v1936_v12 = vsub.f32 %v6397_v32, %v1927_v10  ;;  %v1993_v10 = vld [vmem:[#allocation4 + $0x10] sm:$0xff] }
 0x30b   : > { %v5633_v13 = vpop.eup %5632 }
 0x30c   : > { %v1942_v14 = vmul.f32 1.442695, %v1936_v12  ;;  %v1946_v15 = vmul.f32 %v5633_v13, %v4879_v11  ;;  %v1994_v12 = vld [vmem:[#allocation4 + $0x18] sm:$0xff] }
 0x30d   : > { %v1932_v19 = vpop.permute.xlu1 %1931 }
 0x30e   : > { %5636 = vpow2.f32 %v1942_v14  ;;  %v1937_v20 = vsub.f32 %v6399_v33, %v1932_v19  ;;  %v1970_v21 = vsel %vm1897_vm6, %v1946_v15, 0.0  ;;  %v2019_v22 = vpack.c.bf16 %v1946_v15, %v1946_v15 }
 0x30f   : > { %v5635_v23 = vpop.eup %5634  ;;  %1971 = vadd.xlane.f32.xlu1 %v1970_v21  ;;  %5638 = vpow2.f32 %v1958_v16 }
 0x310   : > { %v1944_v24 = vmul.f32 1.442695, %v1937_v20  ;;  %5451 = vmatmul.mubr.msk.bf16.vlgmr.msra.gmra.mxu0 %vm1897_vm6, %v2019_v22  ;;  %v1947_v25 = vmul.f32 %v5635_v23, %v4879_v11 }
 0x311   : > { %5461 = vmatpush3.bf16.msra.mxu0 %v6384_v17  ;;  %5462 = vmatprep.mubr.msk.bf16.mxu0 %vm5899_vm2, %v5898_v3  ;;  %v1998_v38 = vpop.permute.xlu1 %1997 }
 0x312   : > { %5640 = vpow2.f32 %v1944_v24  ;;  %v1973_v26 = vsel %vm1897_vm6, %v1947_v25, 0.0  ;;  %v2020_v27 = vpack.c.bf16 %v1947_v25, %v1947_v25  ;;  %v2015_v54 = vmul.f32 %v1998_v38, %v1991_v49 }
 0x313   : > { %1974 = vadd.xlane.f32.xlu0 %v1973_v26  ;;  %5642 = vpow2.f32 %v1956_v28 }
 0x314   : > { %5457 = vmatmul.mubr.msk.bf16.vlgmr.msra.gmra.mxu1 %vm1897_vm6, %v2020_v27  ;;  %5644 = vpow2.f32 %v1960_v35 }
 0x315   : > { %5467 = vmatpush3.bf16.msra.mxu1 %v6387_v18  ;;  %5468 = vmatprep.mubr.msk.bf16.mxu1 %vm5899_vm2, %v5898_v3 }
 0x31b   : > { %v5637_v17 = vpop.eup %5636 }
 0x31c   : > { %v1948_v29 = vmul.f32 %v5637_v17, %v4879_v11  ;;  %v5639_v30 = vpop.eup %5638 }
 0x31d   : > { %v1968_v50 = vmul.f32 %v5639_v30, %v1964_v48 }
 0x31e   : > { %v2021_v31 = vpack.c.bf16 %v1948_v29, %v1948_v29  ;;  %v1976_v3 = vsel %vm1897_vm6, %v1948_v29, 0.0 }
 0x31f   : > { %v5641_v32 = vpop.eup %5640 }
 0x320   : > { %v1949_v33 = vmul.f32 %v5641_v32, %v4879_v11  ;;  %2007 = vperm.xlu1 %5581, %v5639_v30   ;;  %5463 = vmatmul.mubr.msk.bf16.vlgmr.msra.gmra.mxu0 %vm1897_vm6, %v2021_v31  ;;  %v5643_v18 = vpop.eup %5642 }
 0x321   : > { %v5645_v37 = vpop.eup %5644  ;;  %v1967_v44 = vmul.f32 %v5643_v18, %v1963_v42 }
 0x322   : > { %v2022_v34 = vpack.c.bf16 %v1949_v33, %v1949_v33  ;;  %v1979_v36 = vsel %vm1897_vm6, %v1949_v33, 0.0  ;;  %v1969_v58 = vmul.f32 %v5645_v37, %v1965_v52 }
 0x324   : > { %5469 = vmatmul.mubr.msk.bf16.vlgmr.msra.gmra.mxu1 %vm1897_vm6, %v2022_v34 }
 0x329   : > { %2002 = vperm.xlu0 %5580, %v5643_v18  }
 0x344   : > { %1977 = vadd.xlane.f32.xlu1 %v1976_v3 }
 0x348   : > { %1980 = vadd.xlane.f32.xlu1 %v1979_v36 }
 0x359   : > { %2012 = vperm.xlu1 %5581, %v5645_v37  }
 0x398   : > { %v1972_v41 = vpop.xlane.xlu1 %1971 }
 0x399   : > { %v1982_v43 = vadd.f32 %v1972_v41, %v1966_v40 }
 0x39b   : > { %1987 = vst.msk [vmem:[#allocation3] sm:$0xff] %vm1986_vm7, %v1982_v43 }
 0x39c   : > { %v1975_v45 = vpop.xlane.xlu0 %1974  ;;  %v2008_v47 = vpop.permute.xlu1 %2007 }
 0x39d   : > { %v1983_v46 = vadd.f32 %v1975_v45, %v1967_v44  ;;  %v2017_v11 = vmul.f32 %v2008_v47, %v1993_v10 }
 0x39f   : > { %1988 = vst.msk [vmem:[#allocation3 + $0x8] sm:$0xff] %vm1986_vm7, %v1983_v46 }
 0x3a4   : > { %v2003_v56 = vpop.permute.xlu0 %2002 }
 0x3a5   : > { %v2016_v1 = vmul.f32 %v2003_v56, %v1992_v55 }
 0x3cd   : > { %v1978_v51 = vpop.xlane.xlu1 %1977 }
 0x3ce   : > { %v1984_v53 = vadd.f32 %v1978_v51, %v1968_v50 }
 0x3d0   : > { %1989 = vst.msk [vmem:[#allocation3 + $0x10] sm:$0xff] %vm1986_vm7, %v1984_v53  ;;  %v2064_v57 = vpop.f32.mrf.mxu0 }
 0x3d1   : > { %v2208_v59 = vadd.f32 %v2064_v57, %v2015_v54  ;;  %v1981_v60 = vpop.xlane.xlu1 %1980 }
 0x3d2   : > { %v1985_v61 = vadd.f32 %v1981_v60, %v1969_v58  ;;  %v5452_v62 = vpop.f32.mrf.mxu0 }
 0x3d3   : > { %2212 = vst.msk [vmem:[#allocation4] sm:$0xff] %vm1689_vm4, %v2208_v59 }
 0x3d4   : > { %1990 = vst.msk [vmem:[#allocation3 + $0x18] sm:$0xff] %vm1986_vm7, %v1985_v61  ;;  %v2067_v2 = vpop.f32.mrf.mxu0  ;;  %v2110_v4 = vpop.f32.mrf.mxu1 }
 0x3d5   : > { %v2209_v5 = vadd.f32 %v2110_v4, %v2016_v1  ;;  %v2013_v13 = vpop.permute.xlu1 %2012 }
 0x3d6   : > { %v5453_v6 = vpop.f32.mrf.mxu0  ;;  %v5458_v7 = vpop.f32.mrf.mxu1  ;;  %v2018_v19 = vmul.f32 %v2013_v13, %v1994_v12 }
 0x3d7   : > { %2213 = vst.msk [vmem:[#allocation4 + $0x8] sm:$0xff] %vm1689_vm4, %v2209_v5 }
 0x3d8   : > { %v2113_v8 = vpop.f32.mrf.mxu1 }
 0x3da   : > { %v5459_v9 = vpop.f32.mrf.mxu1 }
 0x3e0   : > { %v2156_v14 = vpop.f32.mrf.mxu0 }
 0x3e1   : > { %v2210_v15 = vadd.f32 %v2156_v14, %v2017_v11 }
 0x3e2   : > { %v5464_v16 = vpop.f32.mrf.mxu0 }
 0x3e3   : > { %2214 = vst.msk [vmem:[#allocation4 + $0x10] sm:$0xff] %vm1689_vm4, %v2210_v15 }
 0x3e4   : > { %v2159_v20 = vpop.f32.mrf.mxu0  ;;  %v2202_v21 = vpop.f32.mrf.mxu1 }
 0x3e5   : > { %v2211_v22 = vadd.f32 %v2202_v21, %v2018_v19 }
 0x3e6   : > { %v5465_v23 = vpop.f32.mrf.mxu0  ;;  %v5470_v24 = vpop.f32.mrf.mxu1  ;;  %2223 = sbr.rel (%p4884_p10) target bundleno = 3066 (0xbfa), region = 108 }
 0x3e7   : > { %2215 = vst.msk [vmem:[#allocation4 + $0x18] sm:$0xff] %vm1689_vm4, %v2211_v22 }
 0x3e8   : > { %v2205_v25 = vpop.f32.mrf.mxu1 }
 0x3ea   : > { %v5471_v26 = vpop.f32.mrf.mxu1 }
 0x3eb   : > { %v2228_v27 = vld [vmem:[#allocation3] sm:$0xff]  ;;  %v2230_v28 = vld [vmem:[#allocation3 + $0x10] sm:$0xff]  ;;  %v2229_v17 = vld [vmem:[#allocation3 + $0x8] sm:$0xff]  ;;  %v5901_v29 = vmov 0   ;;  %v5902_v32 = vmov 0.0   ;;  %vm5903_vm11 = vmmov 0  }
 0x3ec   : > { %5646 = vset.pattern.permute.xlu0 %v5901_v29  ;;  %5824 = vrcp.f32 %v2228_v27  ;;  %5647 = vset.pattern.permute.xlu1 %v5901_v29  ;;  %v2231_v30 = vld [vmem:[#allocation3 + $0x18] sm:$0xff]  ;;  %v5648_v31 = vld [vmem:[%s7216_s8] sm:$0xff]   ;;  %v5649_v34 = vld [vmem:[%s7216_s8 + $0x8] sm:$0xff]  }
 0x3ed   : > { %5826 = vrcp.f32 %v2230_v28  ;;  %5472 = vmatprep.subr.bf16.mxu0 %v5902_v32  ;;  %5478 = vmatprep.subr.bf16.mxu1 %v5902_v32  ;;  %v2224_v36 = vld [vmem:[#allocation4] sm:$0xff]  ;;  %v2226_v40 = vld [vmem:[#allocation4 + $0x10] sm:$0xff]  ;;  %v2225_v41 = vld [vmem:[#allocation4 + $0x8] sm:$0xff] }
 0x3ee   : > { %5828 = vrcp.f32 %v2229_v17  ;;  %5473 = vmatpush3.bf16.msra.mxu0 %v5648_v31  ;;  %5474 = vmatprep.mubr.msk.bf16.mxu0 %vm5903_vm11, %v5902_v32  ;;  %v5650_v42 = vld [vmem:[%s7216_s8 + $0x10] sm:$0xff]   ;;  %v5651_v47 = vld [vmem:[%s7216_s8 + $0x18] sm:$0xff]   ;;  %v4893_v11 = vld [vmem:[%s7217_s9] ss:$0 sm:$0xff] }
 0x3ef   : > { %5830 = vrcp.f32 %v2231_v30  ;;  %5484 = vmatprep.subr.bf16.mxu0 %v5902_v32  ;;  %5480 = vmatprep.mubr.msk.bf16.mxu1 %vm5903_vm11, %v5902_v32  ;;  %v2227_v50 = vld [vmem:[#allocation4 + $0x18] sm:$0xff]  ;;  %v2483_v15 = vld [vmem:[%s6063_s25] sm:$0xff] }
 0x3f0   : > { %5479 = vmatpush3.bf16.msra.mxu1 %v5649_v34  ;;  %v5654_v28 = vld [vmem:[%s7220_s12 + $0x13c] ss:$52 sps:$4 sm:$0xff]   ;;  %v5657_v17 = vld [vmem:[%s7220_s12 + $0x144] ss:$52 sps:$4 sm:$0xff]   ;;  %v5655_v31 = vld [vmem:[%s7220_s12 + $0x140] ss:$52 sps:$4 sm:$0xff]  }
 0x3f1   : > { %5490 = vmatprep.subr.bf16.mxu1 %v5902_v32  ;;  %v5652_v30 = vld [vmem:[%s7220_s12 + $0x138] ss:$52 sps:$4 sm:$0xff]   ;;  %v5663_v34 = vld [vmem:[%s7220_s12 + $0xdc] ss:$52 sps:$4 sm:$0xff]  }
 0x3f9   : > { %v5825_v33 = vpop.eup %5824 }
 0x3fa   : > { %v5827_v18 = vpop.eup %5826  ;;  %2238 = vperm.xlu0 %5646, %v5825_v33   ;;  %v5660_v33 = vld [vmem:[%s7220_s12 + $0xd4] ss:$52 sps:$4 sm:$0xff]  }
 0x3fb   : > { %v5829_v3 = vpop.eup %5828  ;;  %2248 = vperm.xlu1 %5647, %v5827_v18   ;;  %v5658_v18 = vld [vmem:[%s7220_s12 + $0xd0] ss:$52 sps:$4 sm:$0xff]  }
 0x3fc   : > { %v5831_v35 = vpop.eup %5830 }
 0x3fe   : > { %2243 = vperm.xlu0 %5646, %v5829_v3   ;;  %v5661_v3 = vld [vmem:[%s7220_s12 + $0xd8] ss:$52 sps:$4 sm:$0xff]  }
 0x3ff   : > { %2253 = vperm.xlu1 %5647, %v5831_v35   ;;  %v5666_v35 = vld [vmem:[%s7220_s12 + $0x6c] ss:$52 sps:$4 sm:$0xff]  }
 0x475   : > { %v2239_v37 = vpop.permute.xlu0 %2238 }
 0x476   : > { %v2256_v38 = vmul.f32 %v2239_v37, %v2224_v36  ;;  %v2249_v39 = vpop.permute.xlu1 %2248  ;;  %v5669_v36 = vld [vmem:[%s7220_s12 + $0x74] ss:$52 sps:$4 sm:$0xff]  }
 0x477   : > { %v2258_v45 = vmul.f32 %v2249_v39, %v2226_v40  ;;  %v5664_v37 = vld [vmem:[%s7220_s12 + $0x68] ss:$52 sps:$4 sm:$0xff]   ;;  %v5672_v39 = vld [vmem:[%s7220_s12 + $0x4] ss:$52 sps:$4 sm:$0xff]   ;;  %v5675_v40 = vld [vmem:[%s7220_s12 + $0xc] ss:$52 sps:$4 sm:$0xff]  }
 0x478   : > { %v2260_v43 = vpack.c.bf16 %v2256_v38, %v2256_v38  ;;  %v5667_v38 = vld [vmem:[%s7220_s12 + $0x70] ss:$52 sps:$4 sm:$0xff]  }
 0x479   : > { %v2244_v44 = vpop.permute.xlu0 %2243  ;;  %v2262_v51 = vpack.c.bf16 %v2258_v45, %v2258_v45 }
 0x47a   : > { %v2257_v46 = vmul.f32 %v2244_v44, %v2225_v41  ;;  %5475 = vmatmul.mubr.msk.bf16.vlgmr.msra.gmra.mxu0 %vm1689_vm4, %v2260_v43  ;;  %v2254_v49 = vpop.permute.xlu1 %2253  ;;  %v5670_v41 = vld [vmem:[%s7220_s12] ss:$52 sps:$4 sm:$0xff]  }
 0x47b   : > { %5485 = vmatpush3.bf16.msra.mxu0 %v5650_v42  ;;  %5486 = vmatprep.mubr.msk.bf16.mxu0 %vm5903_vm11, %v5902_v32  ;;  %v2259_v52 = vmul.f32 %v2254_v49, %v2227_v50  ;;  %v5673_v42 = vld [vmem:[%s7220_s12 + $0x8] ss:$52 sps:$4 sm:$0xff]   ;;  %v5678_v43 = vld [vmem:[%s7220_s12 + $0x14c] ss:$52 sps:$4 sm:$0xff]  }
 0x47c   : > { %v2261_v48 = vpack.c.bf16 %v2257_v46, %v2257_v46  ;;  %2916 = vmatprep.subr.bf16.mxu0 %v5654_v28  ;;  %v5681_v44 = vld [vmem:[%s7220_s12 + $0x154] ss:$52 sps:$4 sm:$0xff]   ;;  %v4894_v49 = vld [vmem:[%s7218_s10] ss:$0 sm:$0xff]  ;;  %v5727_v28 = vld [vmem:[%s7220_s12 + $0x30] ss:$52 sps:$4 sm:$0xff]  }
 0x47d   : > { %v2263_v53 = vpack.c.bf16 %v2259_v52, %v2259_v52 }
 0x47e   : > { %5481 = vmatmul.mubr.msk.bf16.vlgmr.msra.gmra.mxu1 %vm1689_vm4, %v2261_v48 }
 0x47f   : > { %5491 = vmatpush3.bf16.msra.mxu1 %v5651_v47  ;;  %5492 = vmatprep.mubr.msk.bf16.mxu1 %vm5903_vm11, %v5902_v32 }
 0x480   : > { %2957 = vmatprep.subr.bf16.mxu1 %v5657_v17  ;;  %v6711_v17 = vsub.s32 0, %v6433_v63 }
 0x482   : > { %5487 = vmatmul.mubr.msk.bf16.vlgmr.msra.gmra.mxu0 %vm1689_vm4, %v2262_v51  ;;  %v4895_v51 = vld [vmem:[%s7219_s11] ss:$0 sm:$0xff] }
 0x483   : > { %2940 = vmatprep.mubr.bf16.mxu0 %v5901_v29  ;;  %2917 = vmatpush1.bf16.msra.mxu0 %v5652_v30  ;;  %v6714_v30 = vsub.s32 2, %v6433_v63 }
 0x484   : > { %2918 = vmatprep.subr.bf16.mxu0 %v5660_v33  ;;  %v6720_v33 = vsub.s32 1, %v6433_v63 }
 0x486   : > { %5493 = vmatmul.mubr.msk.bf16.vlgmr.msra.gmra.mxu1 %vm1689_vm4, %v2263_v53 }
 0x487   : > { %2981 = vmatprep.mubr.bf16.mxu1 %v5901_v29  ;;  %2958 = vmatpush1.bf16.msra.mxu1 %v5655_v31  ;;  %v2572_v31 = vld [vmem:[%s7221_s13] sm:$0xff] }
 0x488   : > { %2959 = vmatprep.subr.bf16.mxu1 %v5663_v34  ;;  %2919 = vmatpush1.bf16.msra.mxu0 %v5658_v18  ;;  %v6723_v34 = vsub.s32 3, %v6433_v63 }
 0x489   : > { %2920 = vmatprep.subr.bf16.mxu0 %v5666_v35  ;;  %v2587_v35 = vrot.slane %v2572_v31, %v6714_v30 }
 0x48b   : > { %2960 = vmatpush1.bf16.msra.mxu1 %v5661_v3  ;;  %v2579_v3 = vrot.slane %v2572_v31, %v6711_v17 }
 0x48c   : > { %2961 = vmatprep.subr.bf16.mxu1 %v5669_v36  ;;  %2921 = vmatpush1.bf16.msra.mxu0 %v5664_v37  ;;  %v2583_v36 = vrot.slane %v2572_v31, %v6720_v33  ;;  %v2591_v37 = vrot.slane %v2572_v31, %v6723_v34 }
 0x48d   : > { %2922 = vmatprep.subr.bf16.mxu0 %v5672_v39 }
 0x48f   : > { %2962 = vmatpush1.bf16.msra.mxu1 %v5667_v38 }
 0x490   : > { %2963 = vmatprep.subr.bf16.mxu1 %v5675_v40  ;;  %2923 = vmatpush1.bf16.msra.mxu0 %v5670_v41 }
 0x491   : > { %2998 = vmatprep.subr.bf16.mxu0 %v5678_v43 }
 0x493   : > { %2964 = vmatpush1.bf16.msra.mxu1 %v5673_v42 }
 0x494   : > { %3039 = vmatprep.subr.bf16.mxu1 %v5681_v44 }
 0x53a   : > { %v2315_v54 = vpop.f32.mrf.mxu0 }
 0x53b   : > { %v2468_v1 = vsel %vm806_vm3, %v2315_v54, 0.0  ;;  %v5676_v54 = vld [vmem:[%s7220_s12 + $0x148] ss:$52 sps:$4 sm:$0xff]  }
 0x53c   : > { %v5476_v55 = vpop.f32.mrf.mxu0 }
 0x53d   : > { %v5679_v55 = vld [vmem:[%s7220_s12 + $0x150] ss:$52 sps:$4 sm:$0xff]  }
 0x53e   : > { %v2318_v56 = vpop.f32.mrf.mxu0  ;;  %v2364_v57 = vpop.f32.mrf.mxu1 }
 0x53f   : > { %v2469_v60 = vsel %vm806_vm3, %v2364_v57, 0.0  ;;  %v5684_v57 = vld [vmem:[%s7220_s12 + $0xe4] ss:$52 sps:$4 sm:$0xff]  }
 0x540   : > { %v5477_v58 = vpop.f32.mrf.mxu0  ;;  %v5482_v59 = vpop.f32.mrf.mxu1  ;;  %v2470_v4 = vadd.f32 %v2469_v60, %v2468_v1  ;;  %v5685_v60 = vld [vmem:[%s7220_s12 + $0xe8] ss:$52 sps:$4 sm:$0xff]   ;;  %v5688_v1 = vld [vmem:[%s7220_s12 + $0x78] ss:$52 sps:$4 sm:$0xff]  }
 0x541   : > { %v5687_v58 = vld [vmem:[%s7220_s12 + $0xec] ss:$52 sps:$4 sm:$0xff]  }
 0x542   : > { %v2367_v61 = vpop.f32.mrf.mxu1  ;;  %v2413_v62 = vpop.f32.mrf.mxu0  ;;  %v5682_v59 = vld [vmem:[%s7220_s12 + $0xe0] ss:$52 sps:$4 sm:$0xff]  }
 0x543   : > { %v2471_v2 = vsel %vm806_vm3, %v2413_v62, 0.0  ;;  %v5690_v61 = vld [vmem:[%s7220_s12 + $0x7c] ss:$52 sps:$4 sm:$0xff]   ;;  %v5693_v62 = vld [vmem:[%s7220_s12 + $0x84] ss:$52 sps:$4 sm:$0xff]  }
 0x544   : > { %v5483_v5 = vpop.f32.mrf.mxu1  ;;  %v5488_v6 = vpop.f32.mrf.mxu0  ;;  %v2472_v7 = vadd.f32 %v2471_v2, %v2470_v4  ;;  %v5691_v2 = vld [vmem:[%s7220_s12 + $0x80] ss:$52 sps:$4 sm:$0xff]  }
 0x545   : > { %v5696_v4 = vld [vmem:[%s7220_s12 + $0x14] ss:$52 sps:$4 sm:$0xff]   ;;  %v5699_v5 = vld [vmem:[%s7220_s12 + $0x1c] ss:$52 sps:$4 sm:$0xff]  }
 0x546   : > { %v2416_v8 = vpop.f32.mrf.mxu0  ;;  %v2462_v9 = vpop.f32.mrf.mxu1  ;;  %v5694_v6 = vld [vmem:[%s7220_s12 + $0x10] ss:$52 sps:$4 sm:$0xff]  }
 0x547   : > { %v2473_v10 = vsel %vm806_vm3, %v2462_v9, 0.0  ;;  %v5702_v8 = vld [vmem:[%s7220_s12 + $0x15c] ss:$52 sps:$4 sm:$0xff]   ;;  %v5705_v9 = vld [vmem:[%s7220_s12 + $0x164] ss:$52 sps:$4 sm:$0xff]  }
 0x548   : > { %v2474_v12 = vadd.f32 %v2473_v10, %v2472_v7  ;;  %v5489_v13 = vpop.f32.mrf.mxu0  ;;  %v5494_v14 = vpop.f32.mrf.mxu1  ;;  %v5697_v7 = vld [vmem:[%s7220_s12 + $0x18] ss:$52 sps:$4 sm:$0xff]  }
 0x549   : > { %v5700_v10 = vld [vmem:[%s7220_s12 + $0x158] ss:$52 sps:$4 sm:$0xff]   ;;  %v5711_v13 = vld [vmem:[%s7220_s12 + $0xfc] ss:$52 sps:$4 sm:$0xff]  }
 0x54a   : > { %v2482_v16 = vadd.f32 %v4893_v11, %v2474_v12  ;;  %v2465_v19 = vpop.f32.mrf.mxu1  ;;  %v5703_v11 = vld [vmem:[%s7220_s12 + $0x160] ss:$52 sps:$4 sm:$0xff]   ;;  %v5706_v14 = vld [vmem:[%s7220_s12 + $0xf0] ss:$52 sps:$4 sm:$0xff]  }
 0x54b   : > { %v5708_v12 = vld [vmem:[%s7220_s12 + $0xf4] ss:$52 sps:$4 sm:$0xff]  }
 0x54c   : > { %v5495_v20 = vpop.f32.mrf.mxu1  ;;  %v2484_v21 = vadd.f32 %v2483_v15, %v2482_v16  ;;  %v5709_v15 = vld [vmem:[%s7220_s12 + $0xf8] ss:$52 sps:$4 sm:$0xff]   ;;  %v5717_v19 = vld [vmem:[%s7220_s12 + $0x94] ss:$52 sps:$4 sm:$0xff]  }
 0x54d   : > { %v5714_v16 = vld [vmem:[%s7220_s12 + $0x8c] ss:$52 sps:$4 sm:$0xff]   ;;  %v5712_v20 = vld [vmem:[%s7220_s12 + $0x88] ss:$52 sps:$4 sm:$0xff]  }
 0x54e   : > { %v2485_v22 = vsel %vm806_vm3, %v2484_v21, 0.0 }
 0x54f   : > { %2486 = vadd.xlane.f32.xlu0 %v2485_v22  ;;  %v5720_v22 = vld [vmem:[%s7220_s12 + $0x24] ss:$52 sps:$4 sm:$0xff]  }
 0x5d8   : > { %v2487_v23 = vpop.xlane.xlu0 %2486 }
 0x5d9   : > { %v2489_v24 = vmul.f32 0.015625, %v2487_v23  ;;  %v5718_v23 = vld [vmem:[%s7220_s12 + $0x20] ss:$52 sps:$4 sm:$0xff]  }
 0x5db   : > { %v2490_v25 = vsub.f32 %v2484_v21, %v2489_v24  ;;  %v5715_v21 = vld [vmem:[%s7220_s12 + $0x90] ss:$52 sps:$4 sm:$0xff]   ;;  %v5721_v24 = vld [vmem:[%s7220_s12 + $0x28] ss:$52 sps:$4 sm:$0xff]  }
 0x5dd   : > { %v2491_v26 = vmul.f32 %v2490_v25, %v2490_v25 }
 0x5df   : > { %v2492_v27 = vsel %vm806_vm3, %v2491_v26, 0.0  ;;  %v5725_v26 = vld [vmem:[%s7220_s12 + $0x100] ss:$52 sps:$4 sm:$0xff]  }
 0x5e0   : > { %2493 = vadd.xlane.f32.xlu1 %v2492_v27  ;;  %v5726_v27 = vld [vmem:[%s7220_s12 + $0x98] ss:$52 sps:$4 sm:$0xff]  }
 0x669   : > { %v2494_v45 = vpop.xlane.xlu1 %2493 }
 0x66a   : > { %v2495_v46 = vmul.f32 0.015625, %v2494_v45 }
 0x66c   : > { %v2496_v47 = vadd.f32 1e-05, %v2495_v46 }
 0x66e   : > { %5832 = vrsqrt.f32 %v2496_v47 }
 0x67b   : > { %v5833_v48 = vpop.eup %5832 }
 0x67c   : > { %v2498_v50 = vmul.f32 %v5833_v48, %v2490_v25  ;;  %v5724_v25 = vld [vmem:[%s7220_s12 + $0x168] ss:$52 sps:$4 sm:$0xff]  }
 0x67e   : > { %v2506_v52 = vmul.f32 %v4894_v49, %v2498_v50 }
 0x680   : > { %v6575_v53 = vadd.f32 %v4895_v51, %v2506_v52 }
 0x682   : > { %v6585_v56 = vpack.c.bf16 %v6575_v53, %v6575_v53 }
 0x684   : > { %4948 = vmatmul.mubr.msk.bf16.vlgmr.msra.gmra.mxu0 %vm806_vm3, %v6585_v56  ;;  %4949 = vmatmul.mubr.msk.bf16.vlgmr.msra.gmra.mxu1 %vm806_vm3, %v6585_v56 }
 0x685   : > { %2999 = vmatpush1.bf16.msra.mxu0 %v5676_v54  ;;  %3040 = vmatpush1.bf16.msra.mxu1 %v5679_v55 }
 0x686   : > { %3000 = vmatprep.subr.bf16.mxu0 %v5684_v57  ;;  %3041 = vmatprep.subr.bf16.mxu1 %v5687_v58 }
 0x687   : > { %3022 = vmatprep.mubr.bf16.mxu0 %v5901_v29  ;;  %3063 = vmatprep.mubr.bf16.mxu1 %v5901_v29 }
 0x689   : > { %3001 = vmatpush1.bf16.msra.mxu0 %v5682_v59  ;;  %3042 = vmatpush1.bf16.msra.mxu1 %v5685_v60 }
 0x68a   : > { %3002 = vmatprep.subr.bf16.mxu0 %v5690_v61  ;;  %3043 = vmatprep.subr.bf16.mxu1 %v5693_v62  ;;  %v6733_v61 = vsub.s32 4, %v6433_v63  ;;  %v2602_v62 = vsub.s32 6, %v6433_v63 }
 0x68d   : > { %3003 = vmatpush1.bf16.msra.mxu0 %v5688_v1  ;;  %3044 = vmatpush1.bf16.msra.mxu1 %v5691_v2 }
 0x68e   : > { %3004 = vmatprep.subr.bf16.mxu0 %v5696_v4  ;;  %3045 = vmatprep.subr.bf16.mxu1 %v5699_v5 }
 0x691   : > { %3005 = vmatpush1.bf16.msra.mxu0 %v5694_v6  ;;  %3046 = vmatpush1.bf16.msra.mxu1 %v5697_v7  ;;  %v2598_v6 = vsub.s32 5, %v6433_v63  ;;  %v2606_v7 = vsub.s32 7, %v6433_v63 }
 0x692   : > { %3080 = vmatprep.subr.bf16.mxu0 %v5702_v8  ;;  %3121 = vmatprep.subr.bf16.mxu1 %v5705_v9 }
 0x694   : > { %4950 = vmatmul.mubr.msk.bf16.vlgmr.msra.gmra.mxu0 %vm806_vm3, %v6585_v56  ;;  %4951 = vmatmul.mubr.msk.bf16.vlgmr.msra.gmra.mxu1 %vm806_vm3, %v6585_v56 }
 0x695   : > { %3081 = vmatpush1.bf16.msra.mxu0 %v5700_v10  ;;  %3122 = vmatpush1.bf16.msra.mxu1 %v5703_v11 }
 0x696   : > { %3082 = vmatprep.subr.bf16.mxu0 %v5708_v12  ;;  %3123 = vmatprep.subr.bf16.mxu1 %v5711_v13  ;;  %v2595_v12 = vrot.slane %v2572_v31, %v6733_v61  ;;  %v2603_v13 = vrot.slane %v2572_v31, %v2602_v62 }
 0x697   : > { %3104 = vmatprep.mubr.bf16.mxu0 %v5901_v29  ;;  %3145 = vmatprep.mubr.bf16.mxu1 %v5901_v29  ;;  %v5723_v29 = vld [vmem:[%s7220_s12 + $0x2c] ss:$52 sps:$4 sm:$0xff]  }
 0x699   : > { %3083 = vmatpush1.bf16.msra.mxu0 %v5706_v14  ;;  %3124 = vmatpush1.bf16.msra.mxu1 %v5709_v15  ;;  %v2599_v14 = vrot.slane %v2572_v31, %v2598_v6  ;;  %v2607_v15 = vrot.slane %v2572_v31, %v2606_v7 }
 0x69a   : > { %3084 = vmatprep.subr.bf16.mxu0 %v5714_v16  ;;  %3125 = vmatprep.subr.bf16.mxu1 %v5717_v19 }
 0x69d   : > { %3085 = vmatpush1.bf16.msra.mxu0 %v5712_v20  ;;  %3126 = vmatpush1.bf16.msra.mxu1 %v5715_v21  ;;  %v5905_v20 = vmov 1934713408  }
 0x69e   : > { %3086 = vmatprep.subr.bf16.mxu0 %v5720_v22  ;;  %3127 = vmatprep.subr.bf16.mxu1 %v5723_v29  ;;  %v3303_v21 = vunpack.c.l.s4 %v5905_v20 }
 0x6a1   : > { %3087 = vmatpush1.bf16.msra.mxu0 %v5718_v23  ;;  %3128 = vmatpush1.bf16.msra.mxu1 %v5721_v24 }
 0x6a2   : > { %5496 = vmatprep.subr.bf16.mxu0 %v5902_v32  ;;  %5508 = vmatprep.subr.bf16.mxu1 %v5902_v32 }
 0x6a4   : > { %4952 = vmatmul.mubr.msk.bf16.vlgmr.msra.gmra.mxu0 %vm806_vm3, %v6585_v56  ;;  %4953 = vmatmul.mubr.msk.bf16.vlgmr.msra.gmra.mxu1 %vm806_vm3, %v6585_v56 }
 0x6a5   : > { %5497 = vmatpush3.bf16.msra.mxu0 %v5724_v25  ;;  %5504 = vmatprep.mubr.msk.bf16.mxu0 %vm5903_vm11, %v5902_v32 }
 0x6a6   : > { %5498 = vmatprep.subr.bf16.mxu0 %v5902_v32  ;;  %5510 = vmatprep.mubr.msk.bf16.mxu1 %vm5903_vm11, %v5902_v32 }
 0x6a9   : > { %5499 = vmatpush3.bf16.msra.mxu0 %v5725_v26 }
 0x6aa   : > { %5500 = vmatprep.subr.bf16.mxu0 %v5902_v32 }
 0x6ad   : > { %5501 = vmatpush3.bf16.msra.mxu0 %v5726_v27 }
 0x6ae   : > { %5502 = vmatprep.subr.bf16.mxu0 %v5902_v32  ;;  %v5904_v32 = vmov 1983009808  }
 0x6af   : > { %v3239_v18 = vunpack.c.l.s4 %v5904_v32 }
 0x6b1   : > { %5503 = vmatpush3.bf16.msra.mxu0 %v5727_v28  ;;  %v3240_v40 = vunpack.c.0.s8 %v3239_v18 }
 0x6b3   : > { %v6730_v49 = vsub.s32 %v3240_v40, %v6433_v63 }
 0x6b4   : > { %5505 = vmatmul.mubr.msk.bf16.vlgmr.msra.gmra.mxu0 %vm806_vm3, %v6585_v56 }
 0x744   : > { %v2942_v38 = vpop.f32.mrf.mxu0  ;;  %v2983_v39 = vpop.f32.mrf.mxu1 }
 0x745   : > { %v2943_v41 = vadd.f32 %v2942_v38, %v2579_v3  ;;  %v2984_v42 = vadd.f32 %v2983_v39, %v2587_v35  ;;  %v3304_v3 = vunpack.c.0.s8 %v3303_v21 }
 0x746   : > { %v2944_v43 = vpop.f32.mrf.mxu0  ;;  %v2985_v44 = vpop.f32.mrf.mxu1 }
 0x747   : > { %v3194_v45 = vmax.f32 %v2943_v41, 0.0  ;;  %v3196_v46 = vmax.f32 %v2984_v42, 0.0  ;;  %v2945_v47 = vadd.f32 %v2944_v43, %v2583_v36  ;;  %v2986_v48 = vadd.f32 %v2985_v44, %v2591_v37  ;;  %v2573_v42 = vld [vmem:[%s7221_s13 + $0x8] sm:$0x1f] }
 0x748   : > { %v2946_v50 = vpop.f32.mrf.mxu0  ;;  %v2987_v51 = vpop.f32.mrf.mxu1  ;;  %v6753_v43 = vsub.s32 %v3304_v3, %v6433_v63  ;;  %v5754_v63 = vld [vmem:[%s7260_s14 + $0x8] sm:$0xff]  }
 0x749   : > { %v3236_v52 = vcombine.low %v3194_v45, %v3196_v46  ;;  %v3237_v54 = vcombine.high %v3194_v45, %v3196_v46  ;;  %v3195_v55 = vmax.f32 %v2945_v47, 0.0  ;;  %v3197_v56 = vmax.f32 %v2986_v48, 0.0 }
 0x74a   : > { %v2947_v57 = vpop.f32.mrf.mxu0  ;;  %v2988_v58 = vpop.f32.mrf.mxu1  ;;  %v2611_v48 = vrot.slane %v2573_v42, %v6711_v17 }
 0x74b   : > { %v3252_v59 = vcombine.low %v3195_v55, %v3197_v56  ;;  %v3253_v60 = vcombine.high %v3195_v55, %v3197_v56  ;;  %v3244_v1 = vrot.slane %v3236_v52, %v6730_v49  ;;  %v3251_v2 = vrot.slane %v3237_v54, %v6730_v49 }
 0x74c   : > { %v2619_v55 = vrot.slane %v2573_v42, %v6714_v30 }
 0x74d   : > { %v3260_v4 = vrot.slane %v3252_v59, %v6730_v49  ;;  %v3267_v5 = vrot.slane %v3253_v60, %v6730_v49 }
 0x74f   : > { %v3300_v8 = vcombine.low %v3244_v1, %v3260_v4  ;;  %v3316_v9 = vcombine.low %v3251_v2, %v3267_v5  ;;  %v3301_v10 = vcombine.high %v3244_v1, %v3260_v4  ;;  %v3317_v11 = vcombine.high %v3251_v2, %v3267_v5 }
 0x750   : > { %v2615_v4 = vrot.slane %v2573_v42, %v6720_v33  ;;  %v2623_v5 = vrot.slane %v2573_v42, %v6723_v34 }
 0x751   : > { %v6762_v56 = vrot.slane %v3300_v8, %v6753_v43  ;;  %v6765_v57 = vrot.slane %v3316_v9, %v6753_v43  ;;  %v6768_v58 = vrot.slane %v3301_v10, %v6753_v43  ;;  %v6785_v8 = vrot.slane %v3317_v11, %v6753_v43 }
 0x754   : > { %v3024_v16 = vpop.f32.mrf.mxu0  ;;  %v3065_v19 = vpop.f32.mrf.mxu1 }
 0x755   : > { %v3025_v22 = vadd.f32 %v3024_v16, %v2595_v12  ;;  %v3066_v29 = vadd.f32 %v3065_v19, %v2603_v13 }
 0x756   : > { %v3026_v23 = vpop.f32.mrf.mxu0  ;;  %v3067_v24 = vpop.f32.mrf.mxu1 }
 0x757   : > { %v3198_v25 = vmax.f32 %v3025_v22, 0.0  ;;  %v3200_v26 = vmax.f32 %v3066_v29, 0.0  ;;  %v3027_v27 = vadd.f32 %v3026_v23, %v2599_v14  ;;  %v3068_v28 = vadd.f32 %v3067_v24, %v2607_v15 }
 0x758   : > { %v3028_v32 = vpop.f32.mrf.mxu0  ;;  %v3069_v18 = vpop.f32.mrf.mxu1 }
 0x759   : > { %v3268_v35 = vcombine.low %v3198_v25, %v3200_v26  ;;  %v3269_v36 = vcombine.high %v3198_v25, %v3200_v26  ;;  %v3199_v37 = vmax.f32 %v3027_v27, 0.0  ;;  %v3201_v38 = vmax.f32 %v3068_v28, 0.0 }
 0x75a   : > { %v3029_v31 = vpop.f32.mrf.mxu0  ;;  %v3070_v39 = vpop.f32.mrf.mxu1  ;;  %v2627_v18 = vrot.slane %v2573_v42, %v6733_v61 }
 0x75b   : > { %v3284_v40 = vcombine.low %v3199_v37, %v3201_v38  ;;  %v3285_v41 = vcombine.high %v3199_v37, %v3201_v38  ;;  %v3276_v44 = vrot.slane %v3268_v35, %v6730_v49  ;;  %v3283_v45 = vrot.slane %v3269_v36, %v6730_v49 }
 0x75d   : > { %v3292_v46 = vrot.slane %v3284_v40, %v6730_v49  ;;  %v3299_v47 = vrot.slane %v3285_v41, %v6730_v49 }
 0x75f   : > { %v3332_v50 = vcombine.low %v3276_v44, %v3292_v46  ;;  %v3348_v51 = vcombine.low %v3283_v45, %v3299_v47  ;;  %v3333_v52 = vcombine.high %v3276_v44, %v3292_v46  ;;  %v3349_v54 = vcombine.high %v3283_v45, %v3299_v47 }
 0x761   : > { %v6771_v59 = vrot.slane %v3332_v50, %v6753_v43  ;;  %v6774_v60 = vrot.slane %v3348_v51, %v6753_v43  ;;  %v6777_v1 = vrot.slane %v3333_v52, %v6753_v43  ;;  %v6780_v2 = vrot.slane %v3349_v54, %v6753_v43 }
 0x763   : > { %v3365_v9 = vcombine.high %v6762_v56, %v6771_v59  ;;  %v3364_v10 = vcombine.low %v6762_v56, %v6771_v59  ;;  %v3368_v12 = vcombine.low %v6765_v57, %v6774_v60  ;;  %v3366_v13 = vcombine.low %v6768_v58, %v6777_v1 }
 0x764   : > { %v3106_v14 = vpop.f32.mrf.mxu0  ;;  %v3147_v15 = vpop.f32.mrf.mxu1  ;;  %v3370_v16 = vcombine.low %v6785_v8, %v6780_v2  ;;  %v3367_v11 = vcombine.high %v6768_v58, %v6777_v1  ;;  %v3369_v19 = vcombine.high %v6765_v57, %v6774_v60  ;;  %v3371_v20 = vcombine.high %v6785_v8, %v6780_v2 }
 0x765   : > { %v6803_v21 = vadd.f32 %v3106_v14, %v2611_v48  ;;  %v6805_v22 = vadd.f32 %v3147_v15, %v2619_v55  ;;  %v3709_v55 = vld [vmem:[%s7223_s15] sm:$0xf]  ;;  %v5729_v14 = vld [vmem:[%s7260_s14 + $0xf8] sm:$0xff]  }
 0x766   : > { %v3108_v29 = vpop.f32.mrf.mxu0  ;;  %v3149_v23 = vpop.f32.mrf.mxu1  ;;  %v5731_v15 = vld [vmem:[%s7260_s14 + $0xb8] sm:$0xff]   ;;  %5170 = vmatprep.subr.bf16.mxu0 %v5729_v14  ;;  %v5757_v14 = vld [vmem:[%s7260_s14 + $0xc0] sm:$0xff]  }
 0x767   : > { %v6807_v24 = vadd.f32 %v3108_v29, %v2615_v4  ;;  %v6809_v25 = vadd.f32 %v3149_v23, %v2623_v5  ;;  %v3714_v4 = vsel %vm2026_vm5, %v3709_v55, 0  ;;  %v5728_v5 = vld [vmem:[%s7260_s14 + $0x78] sm:$0xff]   ;;  %5171 = vmatpush3.bf16.msra.mxu0 %v5731_v15  ;;  %v5753_v55 = vld [vmem:[%s7260_s14 + $0xc8] sm:$0xff]  }
 0x768   : > { %v3110_v26 = vpop.f32.mrf.mxu0  ;;  %v3151_v27 = vpop.f32.mrf.mxu1  ;;  %5509 = vmatpush3.bf16.msra.mxu1 %v3714_v4  ;;  %v5744_v4 = vld [vmem:[%s7260_s14 + $0x58] sm:$0xff]  }
 0x769   : > { %5148 = vmatprep.subr.bf16.mxu1 %v5728_v5  ;;  %v5733_v26 = vld [vmem:[%s7260_s14 + $0xf0] sm:$0xff]   ;;  %v5746_v15 = vld [vmem:[%s7260_s14 + $0x18] sm:$0xff]  }
 0x76a   : > { %v3111_v28 = vpop.f32.mrf.mxu0  ;;  %v3152_v32 = vpop.f32.mrf.mxu1  ;;  %v5735_v27 = vld [vmem:[%s7260_s14 + $0xb0] sm:$0xff]   ;;  %5172 = vmatprep.subr.bf16.mxu0 %v5733_v26 }
 0x76b   : > { %5173 = vmatpush3.bf16.msra.mxu0 %v5735_v27  ;;  %v5750_v26 = vld [vmem:[%s7260_s14 + $0x10] sm:$0xff]   ;;  %v5761_v27 = vld [vmem:[%s7260_s14 + $0x1f8] sm:$0xff]  }
 0x774   : > { %v3188_v3 = vpop.f32.mrf.mxu0 }
 0x775   : > { %v3189_v35 = vadd.f32 %v3188_v3, %v2627_v18  ;;  %v5737_v3 = vld [vmem:[%s7260_s14 + $0xe8] sm:$0xff]  }
 0x776   : > { %v5506_v36 = vpop.f32.mrf.mxu0  ;;  %5174 = vmatprep.subr.bf16.mxu0 %v5737_v3 }
 0x777   : > { %v3206_v37 = vsel %vm1897_vm6, %v3189_v35, -inf  ;;  %v5739_v36 = vld [vmem:[%s7260_s14 + $0xa8] sm:$0xff]  }
 0x778   : > { %3207 = vmax.xlane.f32.xlu0 %v3206_v37  ;;  %v3191_v38 = vpop.f32.mrf.mxu0  ;;  %5175 = vmatpush3.bf16.msra.mxu0 %v5739_v36 }
 0x77a   : > { %v5507_v31 = vpop.f32.mrf.mxu0 }
 0x77b   : > { %v5730_v31 = vld [vmem:[%s7260_s14 + $0x38] sm:$0xff]  }
 0x801   : > { %v3208_v39 = vpop.xlane.xlu0 %3207 }
 0x802   : > { %v3209_v40 = vsub.f32 %v3189_v35, %v3208_v39  ;;  %vm3217_vm12 = vcmp.ge.f32.partialorder %v3189_v35, %v3208_v39  ;;  %v5741_v39 = vld [vmem:[%s7260_s14 + $0xe0] sm:$0xff]  }
 0x803   : > { %v3218_v41 = vsel %vm3217_vm12, %v6435_v0, 8  ;;  %5176 = vmatprep.subr.bf16.mxu0 %v5741_v39 }
 0x804   : > { %v3210_v44 = vmul.f32 1.442695, %v3209_v40  ;;  %v3219_v45 = vsel %vm1897_vm6, %v3218_v41, 2147483647 }
 0x805   : > { %v3221_v46 = vshra.s32 %v3219_v45, 16  ;;  %v3220_v50 = vand.u32 65535, %v3219_v45  ;;  %v5732_v45 = vld [vmem:[%s7260_s14 + $0x70] sm:$0xff]  }
 0x806   : > { %5834 = vpow2.f32 %v3210_v44 }
 0x807   : > { %v3223_v47 = vcvt.s32.f32 %v3221_v46  ;;  %v3222_v52 = vcvt.s32.f32 %v3220_v50  ;;  %v5749_v50 = vld [vmem:[%s7260_s14 + $0xd0] sm:$0xff]  }
 0x809   : > { %3224 = vmin.xlane.f32.xlu0 %v3223_v47 }
 0x813   : > { %v5835_v42 = vpop.eup %5834 }
 0x814   : > { %v3212_v48 = vsel %vm1897_vm6, %v5835_v42, 0.0  ;;  %v5747_v42 = vld [vmem:[%s7260_s14 + $0x98] sm:$0xff]  }
 0x815   : > { %3213 = vadd.xlane.f32.xlu1 %v3212_v48 }
 0x892   : > { %v3225_v51 = vpop.xlane.xlu0 %3224 }
 0x893   : > { %vm3226_vm13 = vcmp.eq.f32.partialorder %v3223_v47, %v3225_v51  ;;  %v3231_v23 = vcvt.f32.s32 %v3225_v51  ;;  %v5736_v47 = vld [vmem:[%s7260_s14 + $0x68] sm:$0xff]  }
 0x894   : > { %v3227_v54 = vsel %vm3226_vm13, %v3222_v52, inf  ;;  %v5751_v52 = vld [vmem:[%s7260_s14 + $0x90] sm:$0xff]  }
 0x895   : > { %3228 = vmin.xlane.f32.xlu0 %v3227_v54  ;;  %v3232_v32 = vshll.u32 %v3231_v23, 16 }
 0x89e   : > { %v3214_v29 = vpop.xlane.xlu1 %3213 }
 0x89f   : > { %5836 = vrcp.f32 %v3214_v29  ;;  %v5748_v29 = vld [vmem:[%s7260_s14 + $0x50] sm:$0xff]  }
 0x8ac   : > { %v5837_v37 = vpop.eup %5836 }
 0x91e   : > { %v3229_v28 = vpop.xlane.xlu0 %3228 }
 0x91f   : > { %v3230_v18 = vcvt.f32.s32 %v3229_v28  ;;  %v5752_v28 = vld [vmem:[%s7260_s14 + $0x48] sm:$0xff]  }
 0x921   : > { %v3233_v35 = vadd.s32 %v3232_v32, %v3230_v18  ;;  %v5758_v32 = vld [vmem:[%s7260_s14] sm:$0xff]   ;;  %v5760_v18 = vld [vmem:[%s7260_s14 + $0x178] sm:$0xff]  }
 0x923   : > { %vm3234_vm14 = vcmp.eq.s32.totalorder %v6435_v0, %v3233_v35  ;;  %v5743_v0 = vld [vmem:[%s7260_s14 + $0xa0] sm:$0xff]  }
 0x924   : > { %v3235_v38 = vsel %vm3234_vm14, %v5837_v37, 0.0  ;;  %5177 = vmatpush3.bf16.msra.mxu0 %v5743_v0 }
 0x925   : > { %v3708_v40 = vpack.c.bf16 %v3235_v38, %v3235_v38  ;;  %v3382_v41 = vrot.slane %v3235_v38, %v6720_v33  ;;  %v3375_v44 = vrot.slane %v3235_v38, %v6711_v17  ;;  %v5734_v33 = vld [vmem:[%s7260_s14 + $0x30] sm:$0xff]   ;;  %v5745_v17 = vld [vmem:[%s7260_s14 + $0xd8] sm:$0xff]   ;;  %v3403_v46 = vrot.slane %v3235_v38, %v6733_v61  ;;  %v5738_v61 = vld [vmem:[%s7260_s14 + $0x28] sm:$0xff]  }
 0x926   : > { %v3389_v48 = vrot.slane %v3235_v38, %v6714_v30  ;;  %5178 = vmatprep.subr.bf16.mxu0 %v5745_v17  ;;  %v3417_v51 = vrot.slane %v3235_v38, %v2602_v62  ;;  %v5740_v30 = vld [vmem:[%s7260_s14 + $0x60] sm:$0xff]   ;;  %v3396_v54 = vrot.slane %v3235_v38, %v6723_v34  ;;  %v5755_v34 = vld [vmem:[%s7260_s14 + $0x88] sm:$0xff]   ;;  %v3410_v5 = vrot.slane %v3235_v38, %v2598_v6 }
 0x927   : > { %5511 = vmatmul.mubr.msk.bf16.vlgmr.msra.gmra.mxu1 %vm1897_vm6, %v3708_v40  ;;  %3384 = vbcast.lane.b32.xlu0 %v3382_v41, 256  ;;  %v5742_v62 = vld [vmem:[%s7260_s14 + $0x20] sm:$0xff]   ;;  %v3424_v23 = vrot.slane %v3235_v38, %v2606_v7 }
 0x928   : > { %3377 = vbcast.lane.b32.xlu1 %v3375_v44, 256  ;;  %5149 = vmatpush3.bf16.msra.mxu1 %v5730_v31  ;;  %v5759_v6 = vld [vmem:[%s7260_s14 + $0x80] sm:$0xff]  }
 0x929   : > { %5150 = vmatprep.subr.bf16.mxu1 %v5732_v45  ;;  %5179 = vmatpush3.bf16.msra.mxu0 %v5747_v42  ;;  %v5756_v7 = vld [vmem:[%s7260_s14 + $0x40] sm:$0xff]  }
 0x92a   : > { %5180 = vmatprep.subr.bf16.mxu0 %v5749_v50 }
 0x92b   : > { %3405 = vbcast.lane.b32.xlu0 %v3403_v46, 256 }
 0x92c   : > { %3391 = vbcast.lane.b32.xlu1 %v3389_v48, 256  ;;  %5151 = vmatpush3.bf16.msra.mxu1 %v5734_v33 }
 0x92d   : > { %5152 = vmatprep.subr.bf16.mxu1 %v5736_v47  ;;  %5181 = vmatpush3.bf16.msra.mxu0 %v5751_v52 }
 0x92e   : > { %5182 = vmatprep.subr.bf16.mxu0 %v5753_v55 }
 0x92f   : > { %3419 = vbcast.lane.b32.xlu0 %v3417_v51, 256 }
 0x930   : > { %3398 = vbcast.lane.b32.xlu1 %v3396_v54, 256  ;;  %5153 = vmatpush3.bf16.msra.mxu1 %v5738_v61 }
 0x931   : > { %5154 = vmatprep.subr.bf16.mxu1 %v5740_v30  ;;  %5183 = vmatpush3.bf16.msra.mxu0 %v5755_v34 }
 0x932   : > { %5184 = vmatprep.subr.bf16.mxu0 %v5757_v14 }
 0x934   : > { %3412 = vbcast.lane.b32.xlu1 %v3410_v5, 256  ;;  %5155 = vmatpush3.bf16.msra.mxu1 %v5742_v62 }
 0x935   : > { %5156 = vmatprep.subr.bf16.mxu1 %v5744_v4  ;;  %5185 = vmatpush3.bf16.msra.mxu0 %v5759_v6 }
 0x936   : > { %5214 = vmatprep.subr.bf16.mxu0 %v5761_v27 }
 0x938   : > { %3426 = vbcast.lane.b32.xlu1 %v3424_v23, 256  ;;  %5157 = vmatpush3.bf16.msra.mxu1 %v5746_v15 }
 0x939   : > { %5158 = vmatprep.subr.bf16.mxu1 %v5748_v29 }
 0x93c   : > { %5159 = vmatpush3.bf16.msra.mxu1 %v5750_v26 }
 0x93d   : > { %5160 = vmatprep.subr.bf16.mxu1 %v5752_v28 }
 0x940   : > { %5161 = vmatpush3.bf16.msra.mxu1 %v5754_v63 }
 0x941   : > { %5162 = vmatprep.subr.bf16.mxu1 %v5756_v7 }
 0x944   : > { %5163 = vmatpush3.bf16.msra.mxu1 %v5758_v32 }
 0x945   : > { %5192 = vmatprep.subr.bf16.mxu1 %v5760_v18 }
 0x999   : > { %v3385_v3 = vpop.permute.xlu0 %3384 }
 0x99a   : > { %v3378_v35 = vpop.permute.xlu1 %3377 }
 0x99b   : > { %v3428_v38 = vmul.f32 %v3378_v35, %v3364_v10  ;;  %v3429_v10 = vmul.f32 %v3385_v3, %v3365_v9 }
 0x99d   : > { %v3406_v36 = vpop.permute.xlu0 %3405 }
 0x99e   : > { %v3392_v37 = vpop.permute.xlu1 %3391  ;;  %v3432_v44 = vmul.f32 %v3406_v36, %v3368_v12  ;;  %v5762_v36 = vld [vmem:[%s7260_s14 + $0x138] sm:$0xff]  }
 0x99f   : > { %v3430_v31 = vmul.f32 %v3392_v37, %v3366_v13  ;;  %v5764_v37 = vld [vmem:[%s7260_s14 + $0x170] sm:$0xff]  }
 0x9a1   : > { %v3436_v39 = vcombine.low %v3428_v38, %v3430_v31  ;;  %v3437_v40 = vcombine.high %v3428_v38, %v3430_v31  ;;  %v3420_v41 = vpop.permute.xlu0 %3419  ;;  %v5765_v38 = vld [vmem:[%s7260_s14 + $0x1f0] sm:$0xff]  }
 0x9a2   : > { %v3434_v45 = vmul.f32 %v3420_v41, %v3370_v16  ;;  %v3399_v0 = vpop.permute.xlu1 %3398  ;;  %v5767_v41 = vld [vmem:[%s7260_s14 + $0x1b0] sm:$0xff]  }
 0x9a3   : > { %v3431_v13 = vmul.f32 %v3399_v0, %v3367_v11  ;;  %v3444_v12 = vrot.slane %v3436_v39, %v6730_v49  ;;  %v3451_v48 = vrot.slane %v3437_v40, %v6730_v49  ;;  %v5766_v40 = vld [vmem:[%s7260_s14 + $0x130] sm:$0xff]   ;;  %v5770_v0 = vld [vmem:[%s7260_s14 + $0x128] sm:$0xff]  }
 0x9a4   : > { %v3468_v33 = vcombine.low %v3432_v44, %v3434_v45  ;;  %v3469_v17 = vcombine.high %v3432_v44, %v3434_v45  ;;  %v5768_v44 = vld [vmem:[%s7260_s14 + $0x168] sm:$0xff]  }
 0x9a5   : > { %v3452_v46 = vcombine.low %v3429_v10, %v3431_v13  ;;  %v3453_v47 = vcombine.high %v3429_v10, %v3431_v13  ;;  %v5769_v45 = vld [vmem:[%s7260_s14 + $0x1e8] sm:$0xff]   ;;  %v5772_v13 = vld [vmem:[%s7260_s14 + $0x160] sm:$0xff]  }
 0x9a6   : > { %v3413_v42 = vpop.permute.xlu1 %3412  ;;  %v3476_v52 = vrot.slane %v3468_v33, %v6730_v49  ;;  %v3483_v54 = vrot.slane %v3469_v17, %v6730_v49  ;;  %v5771_v10 = vld [vmem:[%s7260_s14 + $0x1a8] sm:$0xff]   ;;  %v5773_v33 = vld [vmem:[%s7260_s14 + $0x1e0] sm:$0xff]  }
 0x9a7   : > { %v3460_v16 = vrot.slane %v3452_v46, %v6730_v49  ;;  %v3467_v61 = vrot.slane %v3453_v47, %v6730_v49  ;;  %v3433_v58 = vmul.f32 %v3413_v42, %v3369_v19  ;;  %v5774_v17 = vld [vmem:[%s7260_s14 + $0x120] sm:$0xff]   ;;  %v5776_v47 = vld [vmem:[%s7260_s14 + $0x158] sm:$0xff]  }
 0x9a8   : > { %v5775_v46 = vld [vmem:[%s7260_s14 + $0x1a0] sm:$0xff]   ;;  %v5777_v42 = vld [vmem:[%s7260_s14 + $0x1d8] sm:$0xff]  }
 0x9a9   : > { %v3500_v50 = vcombine.low %v3444_v12, %v3460_v16  ;;  %v3501_v56 = vcombine.high %v3444_v12, %v3460_v16  ;;  %v3516_v59 = vcombine.low %v3451_v48, %v3467_v61  ;;  %v3517_v9 = vcombine.high %v3451_v48, %v3467_v61  ;;  %v5778_v12 = vld [vmem:[%s7260_s14 + $0x118] sm:$0xff]   ;;  %v5780_v16 = vld [vmem:[%s7260_s14 + $0x150] sm:$0xff]  }
 0x9aa   : > { %v3427_v51 = vpop.permute.xlu1 %3426  ;;  %v5779_v48 = vld [vmem:[%s7260_s14 + $0x198] sm:$0xff]   ;;  %v5781_v61 = vld [vmem:[%s7260_s14 + $0x1d0] sm:$0xff]  }
 0x9ab   : > { %v3435_v1 = vmul.f32 %v3427_v51, %v3371_v20  ;;  %v3508_v57 = vrot.slane %v3500_v50, %v6753_v43  ;;  %v3515_v60 = vrot.slane %v3501_v56, %v6753_v43  ;;  %v3524_v15 = vrot.slane %v3516_v59, %v6753_v43  ;;  %v5782_v50 = vld [vmem:[%s7260_s14 + $0x110] sm:$0xff]   ;;  %v5784_v59 = vld [vmem:[%s7260_s14 + $0x148] sm:$0xff]  }
 0x9ac   : > { %v5783_v56 = vld [vmem:[%s7260_s14 + $0x190] sm:$0xff]   ;;  %v5786_v51 = vld [vmem:[%s7260_s14 + $0x108] sm:$0xff]  }
 0x9ad   : > { %v3484_v11 = vcombine.low %v3433_v58, %v3435_v1  ;;  %v3485_v30 = vcombine.high %v3433_v58, %v3435_v1  ;;  %v5787_v58 = vld [vmem:[%s7260_s14 + $0x188] sm:$0xff]   ;;  %v5788_v1 = vld [vmem:[%s7260_s14 + $0x140] sm:$0xff]  }
 0x9af   : > { %v3492_v62 = vrot.slane %v3484_v11, %v6730_v49  ;;  %v3499_v55 = vrot.slane %v3485_v30, %v6730_v49  ;;  %v3531_v49 = vrot.slane %v3517_v9, %v6753_v43  ;;  %v5785_v9 = vld [vmem:[%s7260_s14 + $0x1c8] sm:$0xff]   ;;  %v5789_v11 = vld [vmem:[%s7260_s14 + $0x1c0] sm:$0xff]  }
 0x9b0   : > { %v5790_v30 = vld [vmem:[%s7260_s14 + $0x100] sm:$0xff]  }
 0x9b1   : > { %v3532_v4 = vcombine.low %v3476_v52, %v3492_v62  ;;  %v3533_v34 = vcombine.high %v3476_v52, %v3492_v62  ;;  %v3548_v5 = vcombine.low %v3483_v54, %v3499_v55  ;;  %v3549_v14 = vcombine.high %v3483_v54, %v3499_v55  ;;  %v5791_v52 = vld [vmem:[%s7260_s14 + $0x180] sm:$0xff]   ;;  %v5792_v54 = vld [vmem:[%s7261_s28 + $0x78] sm:$0xff]  }
 0x9b2   : > { %v5793_v62 = vld [vmem:[%s7261_s28 + $0xf8] sm:$0xff]   ;;  %v3203_v55 = vmax.f32 %v6807_v24, 0.0 }
 0x9b3   : > { %v3540_v2 = vrot.slane %v3532_v4, %v6753_v43  ;;  %v3547_v8 = vrot.slane %v3533_v34, %v6753_v43  ;;  %v3556_v19 = vrot.slane %v3548_v5, %v6753_v43  ;;  %v3563_v20 = vrot.slane %v3549_v14, %v6753_v43  ;;  %v5763_v43 = vld [vmem:[%s7260_s14 + $0x1b8] sm:$0xff]  }
 0x9b4   : > { %v3205_v4 = vmax.f32 %v6809_v25, 0.0  ;;  %v5794_v34 = vld [vmem:[%s7261_s28 + $0x38] sm:$0xff]   ;;  %v5796_v25 = vld [vmem:[%s7261_s28 + $0x70] sm:$0xff]  }
 0x9b5   : > { %v3565_v29 = vcombine.high %v3508_v57, %v3540_v2  ;;  %v3567_v6 = vcombine.high %v3515_v60, %v3547_v8  ;;  %v3564_v23 = vcombine.low %v3508_v57, %v3540_v2  ;;  %v3566_v26 = vcombine.low %v3515_v60, %v3547_v8  ;;  %v5795_v24 = vld [vmem:[%s7261_s28 + $0xb8] sm:$0xff]   ;;  %v5797_v60 = vld [vmem:[%s7261_s28 + $0xf0] sm:$0xff]  }
 0x9b6   : > { %v3569_v27 = vcombine.high %v3524_v15, %v3556_v19  ;;  %v3571_v28 = vcombine.high %v3531_v49, %v3563_v20  ;;  %v6975_v63 = vcombine.low %v3524_v15, %v3556_v19  ;;  %v6977_v7 = vcombine.low %v3531_v49, %v3563_v20  ;;  %v5798_v8 = vld [vmem:[%s7261_s28 + $0x30] sm:$0xff]   ;;  %v5800_v20 = vld [vmem:[%s7261_s28 + $0x68] sm:$0xff]  }
 0x9b7   : > { %v3573_v32 = vpack.c.bf16 %v3565_v29, %v3565_v29  ;;  %v3575_v18 = vpack.c.bf16 %v3567_v6, %v3567_v6  ;;  %v3572_v3 = vpack.c.bf16 %v3564_v23, %v3564_v23  ;;  %v3574_v35 = vpack.c.bf16 %v3566_v26, %v3566_v26  ;;  %v5799_v19 = vld [vmem:[%s7261_s28 + $0xb0] sm:$0xff]   ;;  %v5801_v15 = vld [vmem:[%s7261_s28 + $0xe8] sm:$0xff]   ;;  %v5804_v6 = vld [vmem:[%s7261_s28 + $0x60] sm:$0xff]  }
 0x9b8   : > { %v3577_v31 = vpack.c.bf16 %v3569_v27, %v3569_v27  ;;  %v3579_v39 = vpack.c.bf16 %v3571_v28, %v3571_v28  ;;  %v3576_v5 = vpack.c.bf16 %v6975_v63, %v6975_v63  ;;  %v3578_v14 = vpack.c.bf16 %v6977_v7, %v6977_v7  ;;  %v5802_v49 = vld [vmem:[%s7261_s28 + $0x28] sm:$0xff]   ;;  %v5805_v23 = vld [vmem:[%s7261_s28 + $0xe0] sm:$0xff]   ;;  %v5808_v28 = vld [vmem:[%s7261_s28 + $0x58] sm:$0xff]  }
 0x9b9   : > { %4172 = vmatprep.mubr.bf16.mxu1 %v3573_v32  ;;  %4212 = vmatprep.mubr.bf16.mxu0 %v3575_v18  ;;  %v4301_v57 = vpack.c.bf16 %v3203_v55, %v3203_v55  ;;  %v4303_v2 = vpack.c.bf16 %v3205_v4, %v3205_v4  ;;  %v5803_v29 = vld [vmem:[%s7261_s28 + $0xa8] sm:$0xff]   ;;  %v5806_v26 = vld [vmem:[%s7261_s28 + $0x20] sm:$0xff]   ;;  %v5809_v63 = vld [vmem:[%s7261_s28 + $0xd8] sm:$0xff]  }
 0x9ba   : > { %4173 = vmatmul.mubr.bf16.vlgmr.msra.gmra.mxu1 %v3572_v3  ;;  %4213 = vmatmul.mubr.bf16.vlgmr.msra.gmra.mxu0 %v3574_v35  ;;  %v5807_v27 = vld [vmem:[%s7261_s28 + $0xa0] sm:$0xff]   ;;  %v5810_v32 = vld [vmem:[%s7261_s28 + $0x18] sm:$0xff]   ;;  %v5812_v3 = vld [vmem:[%s7261_s28 + $0x50] sm:$0xff]  }
 0x9bb   : > { %5193 = vmatpush3.bf16.msra.mxu1 %v5762_v36  ;;  %5215 = vmatpush3.bf16.msra.mxu0 %v5763_v43  ;;  %v5811_v18 = vld [vmem:[%s7261_s28 + $0x98] sm:$0xff]   ;;  %v5813_v36 = vld [vmem:[%s7261_s28 + $0xd0] sm:$0xff]  }
 0x9bc   : > { %4252 = vmatprep.mubr.bf16.mxu1 %v3577_v31  ;;  %4292 = vmatprep.mubr.bf16.mxu0 %v3579_v39  ;;  %v5816_v31 = vld [vmem:[%s7261_s28 + $0x48] sm:$0xff]  }
 0x9bd   : > { %5194 = vmatprep.subr.bf16.mxu1 %v5764_v37  ;;  %5216 = vmatprep.subr.bf16.mxu0 %v5765_v38  ;;  %v5814_v37 = vld [vmem:[%s7261_s28 + $0x10] sm:$0xff]  }
 0x9be   : > { %v5815_v38 = vld [vmem:[%s7261_s28 + $0x90] sm:$0xff]  }
 0x9bf   : > { %5195 = vmatpush3.bf16.msra.mxu1 %v5766_v40  ;;  %5217 = vmatpush3.bf16.msra.mxu0 %v5767_v41  ;;  %v5817_v40 = vld [vmem:[%s7261_s28 + $0xc8] sm:$0xff]  }
 0x9c0   : > { %5196 = vmatprep.subr.bf16.mxu1 %v5768_v44  ;;  %5218 = vmatprep.subr.bf16.mxu0 %v5769_v45  ;;  %v5818_v41 = vld [vmem:[%s7261_s28 + $0x8] sm:$0xff]   ;;  %v5820_v45 = vld [vmem:[%s7261_s28 + $0x40] sm:$0xff]  }
 0x9c1   : > { %v5819_v44 = vld [vmem:[%s7261_s28 + $0x88] sm:$0xff]  }
 0x9c3   : > { %5197 = vmatpush3.bf16.msra.mxu1 %v5770_v0  ;;  %5219 = vmatpush3.bf16.msra.mxu0 %v5771_v10  ;;  %v5821_v0 = vld [vmem:[%s7261_s28 + $0xc0] sm:$0xff]  }
 0x9c4   : > { %5198 = vmatprep.subr.bf16.mxu1 %v5772_v13  ;;  %5220 = vmatprep.subr.bf16.mxu0 %v5773_v33  ;;  %v5822_v10 = vld [vmem:[%s7261_s28] sm:$0xff]   ;;  %v3202_v13 = vmax.f32 %v6803_v21, 0.0 }
 0x9c5   : > { %v5823_v33 = vld [vmem:[%s7261_s28 + $0x80] sm:$0xff]  }
 0x9c7   : > { %5199 = vmatpush3.bf16.msra.mxu1 %v5774_v17  ;;  %5221 = vmatpush3.bf16.msra.mxu0 %v5775_v46  ;;  %v3204_v17 = vmax.f32 %v6805_v22, 0.0  ;;  %v4300_v46 = vpack.c.bf16 %v3202_v13, %v3202_v13 }
 0x9c8   : > { %5200 = vmatprep.subr.bf16.mxu1 %v5776_v47  ;;  %5222 = vmatprep.subr.bf16.mxu0 %v5777_v42 }
 0x9c9   : > { %v4302_v47 = vpack.c.bf16 %v3204_v17, %v3204_v17 }
 0x9cb   : > { %5201 = vmatpush3.bf16.msra.mxu1 %v5778_v12  ;;  %5223 = vmatpush3.bf16.msra.mxu0 %v5779_v48 }
 0x9cc   : > { %5202 = vmatprep.subr.bf16.mxu1 %v5780_v16  ;;  %5224 = vmatprep.subr.bf16.mxu0 %v5781_v61 }
 0x9cf   : > { %5203 = vmatpush3.bf16.msra.mxu1 %v5782_v50  ;;  %5225 = vmatpush3.bf16.msra.mxu0 %v5783_v56 }
 0x9d0   : > { %5204 = vmatprep.subr.bf16.mxu1 %v5784_v59  ;;  %5226 = vmatprep.subr.bf16.mxu0 %v5785_v9 }
 0x9d3   : > { %5205 = vmatpush3.bf16.msra.mxu1 %v5786_v51  ;;  %5227 = vmatpush3.bf16.msra.mxu0 %v5787_v58 }
 0x9d4   : > { %5206 = vmatprep.subr.bf16.mxu1 %v5788_v1  ;;  %5228 = vmatprep.subr.bf16.mxu0 %v5789_v11 }
 0x9d7   : > { %5207 = vmatpush3.bf16.msra.mxu1 %v5790_v30  ;;  %5229 = vmatpush3.bf16.msra.mxu0 %v5791_v52 }
 0x9d8   : > { %5236 = vmatprep.subr.bf16.mxu1 %v5792_v54  ;;  %5258 = vmatprep.subr.bf16.mxu0 %v5793_v62 }
 0x9da   : > { %4253 = vmatmul.mubr.bf16.vlgmr.msra.gmra.mxu1 %v3576_v5  ;;  %4293 = vmatmul.mubr.bf16.vlgmr.msra.gmra.mxu0 %v3578_v14 }
 0x9db   : > { %5237 = vmatpush3.bf16.msra.mxu1 %v5794_v34  ;;  %4599 = vmatprep.mubr.bf16.mxu1 %v4301_v57  ;;  %v5020_v57 = vld [vmem:[%s7262_s18] ss:$0 sm:$0xff] }
 0x9dc   : > { %5259 = vmatpush3.bf16.msra.mxu0 %v5795_v24  ;;  %4639 = vmatprep.mubr.bf16.mxu0 %v4303_v2 }
 0x9dd   : > { %5238 = vmatprep.subr.bf16.mxu1 %v5796_v25  ;;  %5260 = vmatprep.subr.bf16.mxu0 %v5797_v60 }
 0x9df   : > { %5239 = vmatpush3.bf16.msra.mxu1 %v5798_v8 }
 0x9e0   : > { %5261 = vmatpush3.bf16.msra.mxu0 %v5799_v19  ;;  %5240 = vmatprep.subr.bf16.mxu1 %v5800_v20 }
 0x9e1   : > { %5262 = vmatprep.subr.bf16.mxu0 %v5801_v15 }
 0x9e3   : > { %5241 = vmatpush3.bf16.msra.mxu1 %v5802_v49 }
 0x9e4   : > { %5263 = vmatpush3.bf16.msra.mxu0 %v5803_v29  ;;  %5242 = vmatprep.subr.bf16.mxu1 %v5804_v6 }
 0x9e5   : > { %5264 = vmatprep.subr.bf16.mxu0 %v5805_v23 }
 0x9e7   : > { %5243 = vmatpush3.bf16.msra.mxu1 %v5806_v26  ;;  %v3750_v7 = vpop.f32.mrf.mxu1 }
 0x9e8   : > { %5265 = vmatpush3.bf16.msra.mxu0 %v5807_v27  ;;  %5244 = vmatprep.subr.bf16.mxu1 %v5808_v28 }
 0x9e9   : > { %5266 = vmatprep.subr.bf16.mxu0 %v5809_v63  ;;  %v5512_v35 = vpop.f32.mrf.mxu1 }
 0x9eb   : > { %5245 = vmatpush3.bf16.msra.mxu1 %v5810_v32  ;;  %v3753_v43 = vpop.f32.mrf.mxu1 }
 0x9ec   : > { %5267 = vmatpush3.bf16.msra.mxu0 %v5811_v18  ;;  %5246 = vmatprep.subr.bf16.mxu1 %v5812_v3 }
 0x9ed   : > { %5268 = vmatprep.subr.bf16.mxu0 %v5813_v36  ;;  %v5513_v39 = vpop.f32.mrf.mxu1 }
 0x9ef   : > { %5247 = vmatpush3.bf16.msra.mxu1 %v5814_v37 }
 0x9f0   : > { %5269 = vmatpush3.bf16.msra.mxu0 %v5815_v38  ;;  %5248 = vmatprep.subr.bf16.mxu1 %v5816_v31  ;;  %v5054_v31 = vld [vmem:[%s7264_s4] ss:$0 sm:$0xff] }
 0x9f1   : > { %5270 = vmatprep.subr.bf16.mxu0 %v5817_v40 }
 0x9f3   : > { %5249 = vmatpush3.bf16.msra.mxu1 %v5818_v41 }
 0x9f4   : > { %5271 = vmatpush3.bf16.msra.mxu0 %v5819_v44  ;;  %5250 = vmatprep.subr.bf16.mxu1 %v5820_v45 }
 0x9f5   : > { %5272 = vmatprep.subr.bf16.mxu0 %v5821_v0 }
 0x9f7   : > { %5251 = vmatpush3.bf16.msra.mxu1 %v5822_v10 }
 0x9f8   : > { %5273 = vmatpush3.bf16.msra.mxu0 %v5823_v33 }
 0x9fa   : > { %4600 = vmatmul.mubr.bf16.vlgmr.msra.gmra.mxu1 %v4300_v46 }
 0x9fb   : > { %4640 = vmatmul.mubr.bf16.vlgmr.msra.gmra.mxu0 %v4302_v47 }
 0xa7a   : > { %v5164_v42 = vpop.f32.mrf.mxu1  ;;  %v5186_v12 = vpop.f32.mrf.mxu0 }
 0xa7c   : > { %v5165_v48 = vpop.f32.mrf.mxu1  ;;  %v5187_v16 = vpop.f32.mrf.mxu0 }
 0xa7d   : > { %v5166_v52 = vadd.f32 %v5165_v48, %v5164_v42  ;;  %v5188_v62 = vadd.f32 %v5187_v16, %v5186_v12 }
 0xa7e   : > { %v5167_v21 = vpop.f32.mrf.mxu1  ;;  %v5189_v61 = vpop.f32.mrf.mxu0 }
 0xa7f   : > { %v4175_v54 = vadd.f32 %v5166_v52, %v3750_v7 }
 0xa80   : > { %v5168_v50 = vpop.f32.mrf.mxu1  ;;  %v5190_v56 = vpop.f32.mrf.mxu0 }
 0xa81   : > { %v4215_v4 = vadd.f32 %v5188_v62, %v4175_v54 }
 0xa9a   : > { %v5208_v59 = vpop.f32.mrf.mxu1  ;;  %v5230_v9 = vpop.f32.mrf.mxu0 }
 0xa9c   : > { %v5209_v51 = vpop.f32.mrf.mxu1  ;;  %v5231_v58 = vpop.f32.mrf.mxu0 }
 0xa9d   : > { %v5210_v55 = vadd.f32 %v5209_v51, %v5208_v59  ;;  %v5232_v14 = vadd.f32 %v5231_v58, %v5230_v9 }
 0xa9e   : > { %v5211_v22 = vpop.f32.mrf.mxu1  ;;  %v5233_v1 = vpop.f32.mrf.mxu0 }
 0xa9f   : > { %v4255_v34 = vadd.f32 %v5210_v55, %v4215_v4 }
 0xaa0   : > { %v5212_v11 = vpop.f32.mrf.mxu1  ;;  %v5234_v30 = vpop.f32.mrf.mxu0 }
 0xaa1   : > { %v4295_v60 = vadd.f32 %v5232_v14, %v4255_v34 }
 0xaa3   : > { %v4647_v26 = vadd.f32 %v4295_v60, %v6575_v53  ;;  %v5053_v53 = vld [vmem:[%s7263_s2] ss:$0 sm:$0xff] }
 0xaba   : > { %v5252_v5 = vpop.f32.mrf.mxu1 }
 0xabb   : > { %v5274_v24 = vpop.f32.mrf.mxu0 }
 0xabc   : > { %v5253_v25 = vpop.f32.mrf.mxu1 }
 0xabd   : > { %v5254_v2 = vadd.f32 %v5253_v25, %v5252_v5  ;;  %v5275_v8 = vpop.f32.mrf.mxu0 }
 0xabe   : > { %v5255_v19 = vpop.f32.mrf.mxu1  ;;  %v5276_v15 = vadd.f32 %v5275_v8, %v5274_v24 }
 0xabf   : > { %v4602_v20 = vadd.f32 %v5254_v2, %v5020_v57  ;;  %v5277_v49 = vpop.f32.mrf.mxu0 }
 0xac0   : > { %v5256_v29 = vpop.f32.mrf.mxu1 }
 0xac1   : > { %v4642_v6 = vadd.f32 %v5276_v15, %v4602_v20  ;;  %v5278_v23 = vpop.f32.mrf.mxu0 }
 0xac3   : > { %v4648_v27 = vadd.f32 %v4647_v26, %v4642_v6 }
 0xac5   : > { %v4649_v28 = vsel %vm806_vm3, %v4648_v27, 0.0 }
 0xac6   : > { %4650 = vadd.xlane.f32.xlu0 %v4649_v28 }
 0xb4f   : > { %v4651_v63 = vpop.xlane.xlu0 %4650 }
 0xb50   : > { %v4652_v7 = vmul.f32 0.015625, %v4651_v63 }
 0xb52   : > { %v4653_v32 = vsub.f32 %v4648_v27, %v4652_v7 }
 0xb54   : > { %v4654_v18 = vmul.f32 %v4653_v32, %v4653_v32 }
 0xb56   : > { %v4655_v3 = vsel %vm806_vm3, %v4654_v18, 0.0 }
 0xb57   : > { %4656 = vadd.xlane.f32.xlu1 %v4655_v3 }
 0xbe0   : > { %v4657_v35 = vpop.xlane.xlu1 %4656 }
 0xbe1   : > { %v4658_v36 = vmul.f32 0.015625, %v4657_v35 }
 0xbe3   : > { %v4659_v43 = vadd.f32 1e-05, %v4658_v36 }
 0xbe5   : > { %5838 = vrsqrt.f32 %v4659_v43 }
 0xbf2   : > { %v5839_v37 = vpop.eup %5838 }
 0xbf3   : > { %v4661_v38 = vmul.f32 %v5839_v37, %v4653_v32 }
 0xbf5   : > { %v4669_v39 = vmul.f32 %v5053_v53, %v4661_v38 }
 0xbf7   : > { %v4677_v40 = vadd.f32 %v5054_v31, %v4669_v39 }
 0xbf9   : > { %4678 = vst.msk [vmem:[%s6068_s24] sm:$0xff] %vm806_vm3, %v4677_v40 }
 0xbfa PF: > { %s7265_s23 = sld [smem:[#allocation8_spill]] }
 0xbfb   : > { %s7266_s1 = sld [smem:[#allocation5_spill]] }
 0xbfc   : > { %s7267_s22 = sld [smem:[#allocation6_spill]] }
 0xbfd   : > { %s7269_s24 = sld [smem:[#allocation9_spill]] }
 0xbfe   : > { %s7270_s2 = sld [smem:[#allocation10_spill]] }
 0xbff   : > { %s7271_s25 = sld [smem:[#allocation11_spill]] }
 0xc00   : > { %s30_s3 = sadd.s32 1, %s7265_s23   ;;  %s7268_s23 = sld [smem:[#allocation7_spill]] }
 0xc01   : > { %p27_p11 = scmp.ge.s32.totalorder %s30_s3, 10  }
 0xc03   :  { %29 = sbr.rel (!%p27_p11) target bundleno = 11 (0xb), region = 141 }

</bundles_post_ra>
